<compile_context>
chip_gen: v6e
topology: v6e:2x2x1
jax: 0.10.0
libtpu: 0.0.40
codegen_flags: <defaults>
</compile_context>

<pallas_src>
import functools

import numpy as np
import jax
import jax.numpy as jnp
from jax.experimental import pallas as pl
from jax.experimental.pallas import tpu as pltpu

EPS = 1e-5
LANE = 128
IM2COL_MAX_ROWS = 2048   # small-M: one im2col matmul amortizes MXU fill/drain


def _round_up(n, m=LANE):
    return ((n + m - 1) // m) * m


def _vmem_capacity_bytes():
    """Per-TensorCore VMEM capacity (v5e/v6e: 128 MiB, v7x: 64 MiB)."""
    try:
        cap = int(getattr(pltpu.get_tpu_info(), "vmem_capacity_bytes", 0) or 0)
        if cap > 0:
            return cap
    except Exception:
        pass
    return 64 * 1024 * 1024      # conservative fallback (v7x)


# ----------------------------------------------------------------------------
# Path A: fused whole-resident kernel (1..n ResBlocks per pallas_call)
# ----------------------------------------------------------------------------
def _bn_train(z, gamma, beta):
    """Training-mode BatchNorm1d, two-pass (centered) variance, folded affine.

    z: (M, C) f32; statistics over the M = N*L rows, per channel (biased var).
    The Conv1d bias normally added before this BN is omitted by the caller:
    it is exactly cancelled by the mean subtraction.
    """
    mean = jnp.mean(z, axis=0, keepdims=True)
    c = z - mean                                       # reused for the variance
    var = jnp.maximum(jnp.mean(c * c, axis=0, keepdims=True), 0.0)
    scale = jax.lax.rsqrt(var + EPS) * gamma           # per-channel (EUP rsqrt)
    return c * scale + beta                            # one FMA per element


def _fused_blocks_kernel(N, L, shortcut_flags, use_im2col, x_ref, *refs):
    o_ref = refs[-1]
    pr = refs[:-1]
    M = N * L
    h = x_ref[...].astype(jnp.float32).reshape(M, x_ref.shape[-1])
    pi = 0
    for has_sc in shortcut_flags:
        wi, gi, bti = pr[pi:pi + 3]; pi += 3
        wc, gc, btc = pr[pi:pi + 3]; pi += 3
        wo, go, bto = pr[pi:pi + 3]; pi += 3
        if has_sc:
            ws, gs, bts = pr[pi:pi + 3]; pi += 3
        K, cmid = wc.shape[0], wc.shape[1]
        x_blk = h
        xb = x_blk.astype(jnp.bfloat16)

        # --- init_conv (1x1) + BN + relu ----------------------------------
        z1 = jnp.dot(xb, wi[...], preferred_element_type=jnp.float32)
        h1 = jnp.maximum(_bn_train(z1, gi[...], bti[...]), 0.0)

        # --- conv (width K, 'same' zero pad) + BN + relu -------------------
        # Padded operand is built directly in bf16 (no f32 im2col copy).
        pad = K // 2
        h1b = h1.reshape(N, L, cmid).astype(jnp.bfloat16)
        if pad:
            zer = jnp.zeros((N, pad, cmid), jnp.bfloat16)
            h1p = jnp.concatenate([zer, h1b, zer], axis=1)
        else:
            h1p = h1b
        if use_im2col:
            # small M: single (M, K*Cmid) @ (K*Cmid, Cmid) matmul
            cols = jnp.concatenate([h1p[:, t:t + L, :] for t in range(K)], axis=-1)
            z2 = jnp.dot(cols.reshape(M, K * cmid),
                         wc[...].reshape(K * cmid, cmid),
                         preferred_element_type=jnp.float32)
        else:
            # large M: K accumulating matmuls, no (M, K*Cmid) buffer at all
            z2 = jnp.zeros((M, cmid), jnp.float32)
            for t in range(K):
                z2 = z2 + jnp.dot(h1p[:, t:t + L, :].reshape(M, cmid), wc[t],
                                  preferred_element_type=jnp.float32)
        h2 = jnp.maximum(_bn_train(z2, gc[...], btc[...]), 0.0)

        # --- out_conv (1x1) + BN (no relu before the residual add) --------
        z3 = jnp.dot(h2.astype(jnp.bfloat16), wo[...],
                     preferred_element_type=jnp.float32)
        h3 = _bn_train(z3, go[...], bto[...])

        # --- shortcut + residual + relu ------------------------------------
        if has_sc:
            zs = jnp.dot(xb, ws[...], preferred_element_type=jnp.float32)
            s = _bn_train(zs, gs[...], bts[...])
        else:
            s = x_blk                                  # identity (Cin == Cout)
        h = jnp.maximum(h3 + s, 0.0)
    o_ref[...] = h.reshape(N, L, -1).astype(o_ref.dtype)


def _block_param_names(bp):
    names = ["wi", "gi", "bti", "wc", "gc", "btc", "wo", "go", "bto"]
    if bp["has_shortcut"]:
        names += ["ws", "gs", "bts"]
    return names


def _block_weight_bytes(bp):
    return sum(int(bp[n].size) * bp[n].dtype.itemsize for n in _block_param_names(bp))


def _fused_vmem_need(N, L, group):
    """Rough resident VMEM footprint for a fused whole-resident group."""
    M = N * L
    weights = sum(_block_weight_bytes(bp) for bp in group)
    act = 0
    for bp in group:
        K, cmid = bp["K"], bp["cmid_p"]
        per = (M * 4 * (bp["cin_p"] + 2 * cmid + 2 * bp["cout_p"])   # f32 live set
               + M * 2 * (bp["cin_p"] + (K + 2) * cmid))             # bf16 temporaries
        act = max(act, per)
    io = M * 4 * (group[0]["cin_p"] + group[-1]["cout_p"])           # in/out buffers
    return weights + act + io


def _plan_groups(N, L, prepped, budget):
    """Greedily fuse consecutive ResBlocks into one pallas_call while the
    estimated footprint fits `budget` -> fewer HBM round-trips of (N, L, C)."""
    groups, cur = [], []
    for bp in prepped:
        if cur and _fused_vmem_need(N, L, cur + [bp]) > budget:
            groups.append(cur)
            cur = [bp]
        else:
            cur = cur + [bp]
    if cur:
        groups.append(cur)
    return groups


def _fused_group_call(x_nlc, group, vmem_cap, out_dtype):
    N, L, _ = x_nlc.shape
    M = N * L
    use_im2col = M <= IM2COL_MAX_ROWS
    args = [x_nlc]
    flops = 0
    for bp in group:
        args += [bp[n] for n in _block_param_names(bp)]
        flops += 2 * M * (bp["cin_p"] * bp["cmid_p"]
                          + bp["K"] * bp["cmid_p"] * bp["cmid_p"]
                          + bp["cmid_p"] * bp["cout_p"]
                          + (bp["cin_p"] * bp["cout_p"] if bp["has_shortcut"] else 0))
    cout_p = group[-1]["cout_p"]
    out_bytes = M * cout_p * np.dtype(out_dtype).itemsize
    bytes_accessed = int(sum(int(a.size) * a.dtype.itemsize for a in args) + out_bytes)
    kern = functools.partial(_fused_blocks_kernel, N, L,
                             tuple(bp["has_shortcut"] for bp in group), use_im2col)
    return pl.pallas_call(
        kern,
        out_shape=jax.ShapeDtypeStruct((N, L, cout_p), out_dtype),
        in_specs=[pl.BlockSpec(memory_space=pltpu.MemorySpace.VMEM)] * len(args),
        out_specs=pl.BlockSpec(memory_space=pltpu.MemorySpace.VMEM),
        cost_estimate=pl.CostEstimate(flops=flops, transcendentals=0,
                                      bytes_accessed=bytes_accessed),
        compiler_params=pltpu.CompilerParams(
            vmem_limit_bytes=int(vmem_cap * 0.85)),
    )(*args)


# ----------------------------------------------------------------------------
# Path B: VMEM-bounded row-tiled fallback (two-pass BN across grid tiles)
# ----------------------------------------------------------------------------
def _sum_sumsq(z):
    """(rows, C) -> (8, C): row0 = sum, row1 = sum of squares, rest zero."""
    s0 = jnp.sum(z, axis=0, keepdims=True)
    s1 = jnp.sum(z * z, axis=0, keepdims=True)
    return jnp.concatenate([s0, s1, jnp.zeros((6, z.shape[1]), jnp.float32)], axis=0)


def _scale_shift(st, gamma, beta, count):
    """Fold training-mode BN into a per-channel FMA: y = z*scale + shift."""
    mean = st[0:1, :] / count
    var = jnp.maximum(st[1:2, :] / count - mean * mean, 0.0)   # clamp cancellation
    scale = jax.lax.rsqrt(var + EPS) * gamma
    shift = beta - mean * scale
    return scale, shift


def _tiled_init_kernel(has_sc, x_ref, wi_ref, *rest):
    if has_sc:
        ws_ref, z1_ref, zs_ref, st1_ref, sts_ref = rest
    else:
        z1_ref, st1_ref = rest
    i = pl.program_id(0)
    b, l, c = x_ref.shape
    xb = x_ref[...].reshape(b * l, c).astype(jnp.bfloat16)

    @pl.when(i == 0)
    def _():
        st1_ref[...] = jnp.zeros_like(st1_ref)
        if has_sc:
            sts_ref[...] = jnp.zeros_like(sts_ref)

    z1 = jnp.dot(xb, wi_ref[...], preferred_element_type=jnp.float32)
    z1_ref[...] = z1.reshape(z1_ref.shape)
    st1_ref[...] += _sum_sumsq(z1)
    if has_sc:
        zs = jnp.dot(xb, ws_ref[...], preferred_element_type=jnp.float32)
        zs_ref[...] = zs.reshape(zs_ref.shape)
        sts_ref[...] += _sum_sumsq(zs)


def _tiled_kconv_kernel(z1_ref, sc_ref, sh_ref, wc_ref, z2_ref, st2_ref):
    i = pl.program_id(0)
    b, l, cmid = z1_ref.shape
    K = wc_ref.shape[0]
    pad = K // 2
    h1 = jnp.maximum(z1_ref[...] * sc_ref[...] + sh_ref[...], 0.0).astype(jnp.bfloat16)
    if pad:
        zer = jnp.zeros((b, pad, cmid), jnp.bfloat16)
        h1p = jnp.concatenate([zer, h1, zer], axis=1)
    else:
        h1p = h1
    acc = jnp.zeros((b * l, cmid), jnp.float32)
    for t in range(K):            # K accumulating MXU matmuls, no im2col buffer
        acc = acc + jnp.dot(h1p[:, t:t + l, :].reshape(b * l, cmid), wc_ref[t],
                            preferred_element_type=jnp.float32)
    z2_ref[...] = acc.reshape(z2_ref.shape)

    @pl.when(i == 0)
    def _():
        st2_ref[...] = jnp.zeros_like(st2_ref)
    st2_ref[...] += _sum_sumsq(acc)


def _tiled_outconv_kernel(z2_ref, sc_ref, sh_ref, wo_ref, z3_ref, st3_ref):
    i = pl.program_id(0)
    b, l, cmid = z2_ref.shape
    h2 = jnp.maximum(z2_ref[...] * sc_ref[...] + sh_ref[...], 0.0)
    z3 = jnp.dot(h2.reshape(b * l, cmid).astype(jnp.bfloat16), wo_ref[...],
                 preferred_element_type=jnp.float32)
    z3_ref[...] = z3.reshape(z3_ref.shape)

    @pl.when(i == 0)
    def _():
        st3_ref[...] = jnp.zeros_like(st3_ref)
    st3_ref[...] += _sum_sumsq(z3)


def _tiled_residual_kernel(has_sc, z3_ref, sc3_ref, sh3_ref, *rest):
    if has_sc:
        zs_ref, scs_ref, shs_ref, y_ref = rest
    else:
        x_ref, y_ref = rest
    h3 = z3_ref[...] * sc3_ref[...] + sh3_ref[...]
    if has_sc:
        s = zs_ref[...] * scs_ref[...] + shs_ref[...]
    else:
        s = x_ref[...].astype(jnp.float32)
    y_ref[...] = jnp.maximum(h3 + s, 0.0).astype(y_ref.dtype)


def _resblock_tiled(x_nlc, bp, vmem_cap):
    """One ResBlock as 4 row-tiled pallas_calls with cross-tile two-pass BN.

    Grid is over the batch axis (full L per step) so the K-wide conv needs no
    halo; sum/sumsq accumulate into a VMEM-resident output over an 'arbitrary'
    grid axis; the final normalize + residual + relu pass is 'parallel'.
    """
    N, L, cin_p = x_nlc.shape
    cmid_p, cout_p = bp["cmid_p"], bp["cout_p"]
    has_sc = bp["has_shortcut"]
    count = float(N * L)
    vlim = int(vmem_cap * 0.85)
    arb = pltpu.CompilerParams(dimension_semantics=("arbitrary",),
                               vmem_limit_bytes=vlim)
    par = pltpu.CompilerParams(dimension_semantics=("parallel",),
                               vmem_limit_bytes=vlim)

    def full(a):
        return pl.BlockSpec(a.shape, lambda i: (0,) * a.ndim)

    def row(c):
        return pl.BlockSpec((1, L, c), lambda i: (i, 0, 0))

    def stat(c):
        return pl.BlockSpec((8, c), lambda i: (0, 0))

    # pass 1: 1x1 init conv (+ 1x1 shortcut conv) + sum/sumsq stats
    if has_sc:
        out_shape = (jax.ShapeDtypeStruct((N, L, cmid_p), jnp.float32),
                     jax.ShapeDtypeStruct((N, L, cout_p), jnp.float32),
                     jax.ShapeDtypeStruct((8, cmid_p), jnp.float32),
                     jax.ShapeDtypeStruct((8, cout_p), jnp.float32))
        out_specs = (row(cmid_p), row(cout_p), stat(cmid_p), stat(cout_p))
        in_args = (x_nlc, bp["wi"], bp["ws"])
        in_specs = [row(cin_p), full(bp["wi"]), full(bp["ws"])]
    else:
        out_shape = (jax.ShapeDtypeStruct((N, L, cmid_p), jnp.float32),
                     jax.ShapeDtypeStruct((8, cmid_p), jnp.float32))
        out_specs = (row(cmid_p), stat(cmid_p))
        in_args = (x_nlc, bp["wi"])
        in_specs = [row(cin_p), full(bp["wi"])]
    outs = pl.pallas_call(
        functools.partial(_tiled_init_kernel, has_sc), grid=(N,),
        out_shape=out_shape, in_specs=in_specs, out_specs=out_specs,
        compiler_params=arb)(*in_args)
    if has_sc:
        z1, zs, st1, sts = outs
    else:
        z1, st1 = outs

    # pass 2: relu(bn(z1)) -> K-tap conv + stats
    sc1, sh1 = _scale_shift(st1, bp["gi"], bp["bti"], count)
    z2, st2 = pl.pallas_call(
        _tiled_kconv_kernel, grid=(N,),
        out_shape=(jax.ShapeDtypeStruct((N, L, cmid_p), jnp.float32),
                   jax.ShapeDtypeStruct((8, cmid_p), jnp.float32)),
        in_specs=[row(cmid_p), full(sc1), full(sh1), full(bp["wc"])],
        out_specs=(row(cmid_p), stat(cmid_p)),
        compiler_params=arb)(z1, sc1, sh1, bp["wc"])

    # pass 3: relu(bn(z2)) -> 1x1 out conv + stats
    sc2, sh2 = _scale_shift(st2, bp["gc"], bp["btc"], count)
    z3, st3 = pl.pallas_call(
        _tiled_outconv_kernel, grid=(N,),
        out_shape=(jax.ShapeDtypeStruct((N, L, cout_p), jnp.float32),
                   jax.ShapeDtypeStruct((8, cout_p), jnp.float32)),
        in_specs=[row(cmid_p), full(sc2), full(sh2), full(bp["wo"])],
        out_specs=(row(cout_p), stat(cout_p)),
        compiler_params=arb)(z2, sc2, sh2, bp["wo"])

    # pass 4: bn(z3) + shortcut + relu (fully parallel -> megacore)
    sc3, sh3 = _scale_shift(st3, bp["go"], bp["bto"], count)
    if has_sc:
        scs, shs = _scale_shift(sts, bp["gs"], bp["bts"], count)
        args = (z3, sc3, sh3, zs, scs, shs)
        in_specs = [row(cout_p), full(sc3), full(sh3),
                    row(cout_p), full(scs), full(shs)]
    else:
        args = (z3, sc3, sh3, x_nlc)
        in_specs = [row(cout_p), full(sc3), full(sh3), row(cout_p)]
    y = pl.pallas_call(
        functools.partial(_tiled_residual_kernel, has_sc), grid=(N,),
        out_shape=jax.ShapeDtypeStruct((N, L, cout_p), jnp.float32),
        in_specs=in_specs, out_specs=row(cout_p),
        compiler_params=par)(*args)
    return y


# ----------------------------------------------------------------------------
# Parameter prep (done ONCE, outside the per-forward jit path) + forward
# ----------------------------------------------------------------------------
def _prep_convnorm(p, cin_p, cout_p):
    """Pad channels lane-dense, cast conv weight to bf16, drop the conv bias
    (exactly cancelled by the training-mode BN mean subtraction)."""
    k, cin, cout = p["w"].shape
    w = jnp.zeros((k, cin_p, cout_p), jnp.float32).at[:, :cin, :cout].set(p["w"])
    w = w.astype(jnp.bfloat16)
    g = jnp.zeros((1, cout_p), jnp.float32).at[0, :cout].set(p["gamma"])
    bt = jnp.zeros((1, cout_p), jnp.float32).at[0, :cout].set(p["beta"])
    return w, g, bt


def prepare_params(blocks):
    prepped = []
    for blk in blocks:
        _, cin, cmid = blk["init"]["w"].shape
        cout = blk["out"]["w"].shape[2]
        K = blk["conv"]["w"].shape[0]
        cin_p, cmid_p, cout_p = _round_up(cin), _round_up(cmid), _round_up(cout)
        wi, gi, bti = _prep_convnorm(blk["init"], cin_p, cmid_p)
        wc, gc, btc = _prep_convnorm(blk["conv"], cmid_p, cmid_p)
        wo, go, bto = _prep_convnorm(blk["out"], cmid_p, cout_p)
        bp = dict(K=K, cin=cin, cout=cout,
                  cin_p=cin_p, cmid_p=cmid_p, cout_p=cout_p,
                  has_shortcut=blk["shortcut"] is not None,
                  wi=wi[0], gi=gi, bti=bti,
                  wc=wc, gc=gc, btc=btc,
                  wo=wo[0], go=go, bto=bto)
        if bp["has_shortcut"]:
            ws, gs, bts = _prep_convnorm(blk["shortcut"], cin_p, cout_p)
            bp.update(ws=ws[0], gs=gs, bts=bts)
        prepped.append(bp)
    return prepped


def nresblocks_forward(x_ncl, prepped, *, force_tiled=False,
                       interblock_dtype=jnp.float32):
    """Matches nResBlocks1d.forward.  x_ncl: (N, C_in, L) -> (N, C_out, L)."""
    N, cin, L = x_ncl.shape
    cin_p = prepped[0]["cin_p"]
    cout = prepped[-1]["cout"]
    vmem_cap = _vmem_capacity_bytes()
    budget = int(vmem_cap * 0.45)          # headroom for buffers / spills

    x = jnp.transpose(x_ncl, (0, 2, 1))                       # NCL -> NLC
    x = jnp.pad(x, ((0, 0), (0, 0), (0, cin_p - cin)))        # lane-dense chans

    if force_tiled:
        groups = [[bp] for bp in prepped]
        fits = [False] * len(groups)
    else:
        groups = _plan_groups(N, L, prepped, budget)
        fits = [_fused_vmem_need(N, L, g) <= budget for g in groups]

    for gi, (g, fit) in enumerate(zip(groups, fits)):
        if fit:
            odt = jnp.float32 if gi == len(groups) - 1 else interblock_dtype
            x = _fused_group_call(x, g, vmem_cap, odt)
        else:
            for bp in g:
                x = _resblock_tiled(x, bp, vmem_cap)

    x = x[..., :cout].astype(jnp.float32)
    return jnp.transpose(x, (0, 2, 1))                        # NLC -> NCL


# ----------------------------------------------------------------------------
# Parameter init (deterministic, PyTorch-like uniform fan-in init)
# ----------------------------------------------------------------------------
def init_convnorm(key, cin, cout, k):
    kw, kb = jax.random.split(key)
    bound = 1.0 / float(cin * k) ** 0.5
    return dict(
        w=jax.random.uniform(kw, (k, cin, cout), jnp.float32, -bound, bound),
        b=jax.random.uniform(kb, (cout,), jnp.float32, -bound, bound),
        gamma=jnp.ones((cout,), jnp.float32),
        beta=jnp.zeros((cout,), jnp.float32),
    )


def init_resblock(key, cin, cout, k, divisor):
    ch = cout // divisor
    k1, k2, k3, k4 = jax.random.split(key, 4)
    return dict(
        init=init_convnorm(k1, cin, ch, 1),
        conv=init_convnorm(k2, ch, ch, k),
        out=init_convnorm(k3, ch, cout, 1),
        shortcut=init_convnorm(k4, cin, cout, 1) if cin != cout else None,
    )


def init_nresblocks(key, cin, cout, k, nlayers, divisor=2):
    assert nlayers >= 1 and k % 2 == 1
    keys = jax.random.split(key, nlayers)
    blocks = [init_resblock(keys[0], cin, cout, k, divisor)]
    for i in range(1, nlayers):
        blocks.append(init_resblock(keys[i], cout, cout, k, divisor))
    return blocks


# ----------------------------------------------------------------------------
# Pure-JAX reference (same math incl. conv bias + bf16 matmul inputs)
# ----------------------------------------------------------------------------
def _bn_ref(z, gamma, beta):
    mean = jnp.mean(z, axis=(0, 1), keepdims=True)
    var = jnp.mean((z - mean) ** 2, axis=(0, 1), keepdims=True)   # biased var
    return (z - mean) * jax.lax.rsqrt(var + EPS) * gamma + beta


def convnorm_ref(x_nlc, p):
    K = p["w"].shape[0]
    L = x_nlc.shape[1]
    pad = K // 2
    xp = jnp.pad(x_nlc, ((0, 0), (pad, pad), (0, 0)))
    w = p["w"].astype(jnp.bfloat16)
    acc = 0.0
    for t in range(K):
        acc = acc + jnp.einsum("nlc,cd->nld",
                               xp[:, t:t + L, :].astype(jnp.bfloat16), w[t],
                               preferred_element_type=jnp.float32)
    acc = acc + p["b"]
    return _bn_ref(acc, p["gamma"], p["beta"])


def resblock_ref(x_nlc, blk):
    h = jnp.maximum(convnorm_ref(x_nlc, blk["init"]), 0.0)
    h = jnp.maximum(convnorm_ref(h, blk["conv"]), 0.0)
    h = convnorm_ref(h, blk["out"])
    s = x_nlc if blk["shortcut"] is None else convnorm_ref(x_nlc, blk["shortcut"])
    return jnp.maximum(h + s, 0.0)


def nresblocks_fwd_ref(x_ncl, blocks):
    x = jnp.transpose(x_ncl, (0, 2, 1))
    for blk in blocks:
        x = resblock_ref(x, blk)
    return jnp.transpose(x, (0, 2, 1))


# ----------------------------------------------------------------------------
if __name__ == "__main__":
    key = jax.random.PRNGKey(0)
    kx, kp = jax.random.split(key)

    # Small shapes consistent with Conv1d / BatchNorm1d: x is (N, C_in, L).
    N, C_in, L = 2, 4, 16
    C_out, K, NLAYERS = 8, 3, 2

    x = jax.random.normal(kx, (N, C_in, L), jnp.float32)
    blocks = init_nresblocks(kp, C_in, C_out, K, NLAYERS, divisor=2)
    prepped = prepare_params(blocks)      # one-time weight prep, outside jit

    # Path A: fused whole-resident (auto-chosen here; both blocks in one call).
    fwd = jax.jit(lambda xx: nresblocks_forward(xx, prepped))
    y = fwd(x)
    jax.block_until_ready(y)

    # Path B: VMEM-bounded row-tiled / cross-tile two-pass-BN fallback
    # (the path large N*L activations take, exercised here for correctness).
    fwd_tiled = jax.jit(lambda xx: nresblocks_forward(xx, prepped,
                                                      force_tiled=True))
    y_tiled = fwd_tiled(x)
    jax.block_until_ready(y_tiled)

    y_ref = nresblocks_fwd_ref(x, blocks)
    assert y.shape == (N, C_out, L)
    # Tolerance sized for bf16 matmul inputs (identical casts in kernel & ref).
    assert jnp.allclose(y, y_ref, atol=1e-2, rtol=1e-2), \
        "fused-path output mismatch vs reference"
    assert jnp.allclose(y_tiled, y_ref, atol=1e-2, rtol=1e-2), \
        "tiled-path output mismatch vs reference"

    print("KERNEL_OK")
</pallas_src>

<mosaic_0001>
module attributes {stable_mosaic.version = 11 : i64} {
  func.func @_fused_blocks_kernel(%arg0: memref<2x16x128xf32, #tpu.memory_space<vmem>>, %arg1: memref<128x128xbf16, #tpu.memory_space<vmem>>, %arg2: memref<1x128xf32, #tpu.memory_space<vmem>>, %arg3: memref<1x128xf32, #tpu.memory_space<vmem>>, %arg4: memref<3x128x128xbf16, #tpu.memory_space<vmem>>, %arg5: memref<1x128xf32, #tpu.memory_space<vmem>>, %arg6: memref<1x128xf32, #tpu.memory_space<vmem>>, %arg7: memref<128x128xbf16, #tpu.memory_space<vmem>>, %arg8: memref<1x128xf32, #tpu.memory_space<vmem>>, %arg9: memref<1x128xf32, #tpu.memory_space<vmem>>, %arg10: memref<128x128xbf16, #tpu.memory_space<vmem>>, %arg11: memref<1x128xf32, #tpu.memory_space<vmem>>, %arg12: memref<1x128xf32, #tpu.memory_space<vmem>>, %arg13: memref<128x128xbf16, #tpu.memory_space<vmem>>, %arg14: memref<1x128xf32, #tpu.memory_space<vmem>>, %arg15: memref<1x128xf32, #tpu.memory_space<vmem>>, %arg16: memref<3x128x128xbf16, #tpu.memory_space<vmem>>, %arg17: memref<1x128xf32, #tpu.memory_space<vmem>>, %arg18: memref<1x128xf32, #tpu.memory_space<vmem>>, %arg19: memref<128x128xbf16, #tpu.memory_space<vmem>>, %arg20: memref<1x128xf32, #tpu.memory_space<vmem>>, %arg21: memref<1x128xf32, #tpu.memory_space<vmem>>, %arg22: memref<2x16x128xf32, #tpu.memory_space<vmem>>) attributes {dimension_semantics = [], scalar_prefetch = 0 : i64, scratch_operands = 0 : i64, tpu.core_type = #tpu.core_type<tc>} {
    %c0 = arith.constant 0 : index
    %c0_0 = arith.constant 0 : index
    %c0_1 = arith.constant 0 : index
    %0 = vector.load %arg0[%c0, %c0_0, %c0_1] : memref<2x16x128xf32, #tpu.memory_space<vmem>>, vector<2x16x128xf32>
    %1 = vector.shape_cast %0 : vector<2x16x128xf32> to vector<32x128xf32>
    %2 = arith.truncf %1 : vector<32x128xf32> to vector<32x128xbf16>
    %c0_2 = arith.constant 0 : index
    %c0_3 = arith.constant 0 : index
    %3 = vector.load %arg1[%c0_2, %c0_3] : memref<128x128xbf16, #tpu.memory_space<vmem>>, vector<128x128xbf16>
    %cst = arith.constant dense<0.000000e+00> : vector<32x128xf32>
    %4 = tpu.matmul %2, %3, %cst {dimension_numbers = #tpu.dot_dimension_numbers<[1], [0], [0], [1], [0, 0, 1, 1], [], []>} : vector<32x128xbf16>, vector<128x128xbf16>, vector<32x128xf32> -> vector<32x128xf32>
    %c0_4 = arith.constant 0 : index
    %c0_5 = arith.constant 0 : index
    %5 = vector.load %arg2[%c0_4, %c0_5] : memref<1x128xf32, #tpu.memory_space<vmem>>, vector<1x128xf32>
    %c0_6 = arith.constant 0 : index
    %c0_7 = arith.constant 0 : index
    %6 = vector.load %arg3[%c0_6, %c0_7] : memref<1x128xf32, #tpu.memory_space<vmem>>, vector<1x128xf32>
    %cst_8 = arith.constant dense<0.000000e+00> : vector<128xf32>
    %7 = vector.multi_reduction <add>, %4, %cst_8 [0] : vector<32x128xf32> to vector<128xf32>
    %8 = vector.shape_cast %7 : vector<128xf32> to vector<1x128xf32>
    %cst_9 = arith.constant 3.200000e+01 : f32
    %9 = vector.broadcast %cst_9 : f32 to vector<1x128xf32>
    %10 = arith.divf %8, %9 : vector<1x128xf32>
    %11 = vector.broadcast %10 : vector<1x128xf32> to vector<32x128xf32>
    %12 = arith.subf %4, %11 : vector<32x128xf32>
    %13 = arith.mulf %12, %12 : vector<32x128xf32>
    %cst_10 = arith.constant dense<0.000000e+00> : vector<128xf32>
    %14 = vector.multi_reduction <add>, %13, %cst_10 [0] : vector<32x128xf32> to vector<128xf32>
    %15 = vector.shape_cast %14 : vector<128xf32> to vector<1x128xf32>
    %cst_11 = arith.constant 3.200000e+01 : f32
    %16 = vector.broadcast %cst_11 : f32 to vector<1x128xf32>
    %17 = arith.divf %15, %16 : vector<1x128xf32>
    %cst_12 = arith.constant 0.000000e+00 : f32
    %18 = vector.broadcast %cst_12 : f32 to vector<1x128xf32>
    %19 = arith.maximumf %17, %18 : vector<1x128xf32>
    %cst_13 = arith.constant 9.99999974E-6 : f32
    %20 = vector.broadcast %cst_13 : f32 to vector<1x128xf32>
    %21 = arith.addf %19, %20 : vector<1x128xf32>
    %22 = math.rsqrt %21 : vector<1x128xf32>
    %23 = arith.mulf %22, %5 : vector<1x128xf32>
    %24 = vector.broadcast %23 : vector<1x128xf32> to vector<32x128xf32>
    %25 = arith.mulf %12, %24 : vector<32x128xf32>
    %26 = vector.broadcast %6 : vector<1x128xf32> to vector<32x128xf32>
    %27 = arith.addf %25, %26 : vector<32x128xf32>
    %cst_14 = arith.constant 0.000000e+00 : f32
    %28 = vector.broadcast %cst_14 : f32 to vector<32x128xf32>
    %29 = arith.maximumf %27, %28 : vector<32x128xf32>
    %30 = vector.shape_cast %29 : vector<32x128xf32> to vector<2x16x128xf32>
    %31 = arith.truncf %30 : vector<2x16x128xf32> to vector<2x16x128xbf16>
    %cst_15 = arith.constant 0.000000e+00 : bf16
    %32 = vector.broadcast %cst_15 : bf16 to vector<2x1x128xbf16>
    %33 = tpu.concatenate %32, %31, %32 in 1 : vector<2x1x128xbf16>, vector<2x16x128xbf16>, vector<2x1x128xbf16> -> vector<2x18x128xbf16>
    %34 = vector.extract_strided_slice %33 {offsets = [0, 0, 0], sizes = [2, 16, 128], strides = [1, 1, 1]} : vector<2x18x128xbf16> to vector<2x16x128xbf16>
    %35 = vector.extract_strided_slice %33 {offsets = [0, 1, 0], sizes = [2, 16, 128], strides = [1, 1, 1]} : vector<2x18x128xbf16> to vector<2x16x128xbf16>
    %36 = vector.extract_strided_slice %33 {offsets = [0, 2, 0], sizes = [2, 16, 128], strides = [1, 1, 1]} : vector<2x18x128xbf16> to vector<2x16x128xbf16>
    %37 = tpu.concatenate %34, %35, %36 in 2 : vector<2x16x128xbf16>, vector<2x16x128xbf16>, vector<2x16x128xbf16> -> vector<2x16x384xbf16>
    %38 = vector.shape_cast %37 : vector<2x16x384xbf16> to vector<32x384xbf16>
    %c0_16 = arith.constant 0 : index
    %c0_17 = arith.constant 0 : index
    %c0_18 = arith.constant 0 : index
    %39 = vector.load %arg4[%c0_16, %c0_17, %c0_18] : memref<3x128x128xbf16, #tpu.memory_space<vmem>>, vector<3x128x128xbf16>
    %40 = vector.shape_cast %39 : vector<3x128x128xbf16> to vector<384x128xbf16>
    %cst_19 = arith.constant dense<0.000000e+00> : vector<32x128xf32>
    %41 = tpu.matmul %38, %40, %cst_19 {dimension_numbers = #tpu.dot_dimension_numbers<[1], [0], [0], [1], [0, 0, 1, 1], [], []>} : vector<32x384xbf16>, vector<384x128xbf16>, vector<32x128xf32> -> vector<32x128xf32>
    %c0_20 = arith.constant 0 : index
    %c0_21 = arith.constant 0 : index
    %42 = vector.load %arg5[%c0_20, %c0_21] : memref<1x128xf32, #tpu.memory_space<vmem>>, vector<1x128xf32>
    %c0_22 = arith.constant 0 : index
    %c0_23 = arith.constant 0 : index
    %43 = vector.load %arg6[%c0_22, %c0_23] : memref<1x128xf32, #tpu.memory_space<vmem>>, vector<1x128xf32>
    %cst_24 = arith.constant dense<0.000000e+00> : vector<128xf32>
    %44 = vector.multi_reduction <add>, %41, %cst_24 [0] : vector<32x128xf32> to vector<128xf32>
    %45 = vector.shape_cast %44 : vector<128xf32> to vector<1x128xf32>
    %cst_25 = arith.constant 3.200000e+01 : f32
    %46 = vector.broadcast %cst_25 : f32 to vector<1x128xf32>
    %47 = arith.divf %45, %46 : vector<1x128xf32>
    %48 = vector.broadcast %47 : vector<1x128xf32> to vector<32x128xf32>
    %49 = arith.subf %41, %48 : vector<32x128xf32>
    %50 = arith.mulf %49, %49 : vector<32x128xf32>
    %cst_26 = arith.constant dense<0.000000e+00> : vector<128xf32>
    %51 = vector.multi_reduction <add>, %50, %cst_26 [0] : vector<32x128xf32> to vector<128xf32>
    %52 = vector.shape_cast %51 : vector<128xf32> to vector<1x128xf32>
    %cst_27 = arith.constant 3.200000e+01 : f32
    %53 = vector.broadcast %cst_27 : f32 to vector<1x128xf32>
    %54 = arith.divf %52, %53 : vector<1x128xf32>
    %cst_28 = arith.constant 0.000000e+00 : f32
    %55 = vector.broadcast %cst_28 : f32 to vector<1x128xf32>
    %56 = arith.maximumf %54, %55 : vector<1x128xf32>
    %cst_29 = arith.constant 9.99999974E-6 : f32
    %57 = vector.broadcast %cst_29 : f32 to vector<1x128xf32>
    %58 = arith.addf %56, %57 : vector<1x128xf32>
    %59 = math.rsqrt %58 : vector<1x128xf32>
    %60 = arith.mulf %59, %42 : vector<1x128xf32>
    %61 = vector.broadcast %60 : vector<1x128xf32> to vector<32x128xf32>
    %62 = arith.mulf %49, %61 : vector<32x128xf32>
    %63 = vector.broadcast %43 : vector<1x128xf32> to vector<32x128xf32>
    %64 = arith.addf %62, %63 : vector<32x128xf32>
    %cst_30 = arith.constant 0.000000e+00 : f32
    %65 = vector.broadcast %cst_30 : f32 to vector<32x128xf32>
    %66 = arith.maximumf %64, %65 : vector<32x128xf32>
    %67 = arith.truncf %66 : vector<32x128xf32> to vector<32x128xbf16>
    %c0_31 = arith.constant 0 : index
    %c0_32 = arith.constant 0 : index
    %68 = vector.load %arg7[%c0_31, %c0_32] : memref<128x128xbf16, #tpu.memory_space<vmem>>, vector<128x128xbf16>
    %cst_33 = arith.constant dense<0.000000e+00> : vector<32x128xf32>
    %69 = tpu.matmul %67, %68, %cst_33 {dimension_numbers = #tpu.dot_dimension_numbers<[1], [0], [0], [1], [0, 0, 1, 1], [], []>} : vector<32x128xbf16>, vector<128x128xbf16>, vector<32x128xf32> -> vector<32x128xf32>
    %c0_34 = arith.constant 0 : index
    %c0_35 = arith.constant 0 : index
    %70 = vector.load %arg8[%c0_34, %c0_35] : memref<1x128xf32, #tpu.memory_space<vmem>>, vector<1x128xf32>
    %c0_36 = arith.constant 0 : index
    %c0_37 = arith.constant 0 : index
    %71 = vector.load %arg9[%c0_36, %c0_37] : memref<1x128xf32, #tpu.memory_space<vmem>>, vector<1x128xf32>
    %cst_38 = arith.constant dense<0.000000e+00> : vector<128xf32>
    %72 = vector.multi_reduction <add>, %69, %cst_38 [0] : vector<32x128xf32> to vector<128xf32>
    %73 = vector.shape_cast %72 : vector<128xf32> to vector<1x128xf32>
    %cst_39 = arith.constant 3.200000e+01 : f32
    %74 = vector.broadcast %cst_39 : f32 to vector<1x128xf32>
    %75 = arith.divf %73, %74 : vector<1x128xf32>
    %76 = vector.broadcast %75 : vector<1x128xf32> to vector<32x128xf32>
    %77 = arith.subf %69, %76 : vector<32x128xf32>
    %78 = arith.mulf %77, %77 : vector<32x128xf32>
    %cst_40 = arith.constant dense<0.000000e+00> : vector<128xf32>
    %79 = vector.multi_reduction <add>, %78, %cst_40 [0] : vector<32x128xf32> to vector<128xf32>
    %80 = vector.shape_cast %79 : vector<128xf32> to vector<1x128xf32>
    %cst_41 = arith.constant 3.200000e+01 : f32
    %81 = vector.broadcast %cst_41 : f32 to vector<1x128xf32>
    %82 = arith.divf %80, %81 : vector<1x128xf32>
    %cst_42 = arith.constant 0.000000e+00 : f32
    %83 = vector.broadcast %cst_42 : f32 to vector<1x128xf32>
    %84 = arith.maximumf %82, %83 : vector<1x128xf32>
    %cst_43 = arith.constant 9.99999974E-6 : f32
    %85 = vector.broadcast %cst_43 : f32 to vector<1x128xf32>
    %86 = arith.addf %84, %85 : vector<1x128xf32>
    %87 = math.rsqrt %86 : vector<1x128xf32>
    %88 = arith.mulf %87, %70 : vector<1x128xf32>
    %89 = vector.broadcast %88 : vector<1x128xf32> to vector<32x128xf32>
    %90 = arith.mulf %77, %89 : vector<32x128xf32>
    %91 = vector.broadcast %71 : vector<1x128xf32> to vector<32x128xf32>
    %92 = arith.addf %90, %91 : vector<32x128xf32>
    %c0_44 = arith.constant 0 : index
    %c0_45 = arith.constant 0 : index
    %93 = vector.load %arg10[%c0_44, %c0_45] : memref<128x128xbf16, #tpu.memory_space<vmem>>, vector<128x128xbf16>
    %cst_46 = arith.constant dense<0.000000e+00> : vector<32x128xf32>
    %94 = tpu.matmul %2, %93, %cst_46 {dimension_numbers = #tpu.dot_dimension_numbers<[1], [0], [0], [1], [0, 0, 1, 1], [], []>} : vector<32x128xbf16>, vector<128x128xbf16>, vector<32x128xf32> -> vector<32x128xf32>
    %c0_47 = arith.constant 0 : index
    %c0_48 = arith.constant 0 : index
    %95 = vector.load %arg11[%c0_47, %c0_48] : memref<1x128xf32, #tpu.memory_space<vmem>>, vector<1x128xf32>
    %c0_49 = arith.constant 0 : index
    %c0_50 = arith.constant 0 : index
    %96 = vector.load %arg12[%c0_49, %c0_50] : memref<1x128xf32, #tpu.memory_space<vmem>>, vector<1x128xf32>
    %cst_51 = arith.constant dense<0.000000e+00> : vector<128xf32>
    %97 = vector.multi_reduction <add>, %94, %cst_51 [0] : vector<32x128xf32> to vector<128xf32>
    %98 = vector.shape_cast %97 : vector<128xf32> to vector<1x128xf32>
    %cst_52 = arith.constant 3.200000e+01 : f32
    %99 = vector.broadcast %cst_52 : f32 to vector<1x128xf32>
    %100 = arith.divf %98, %99 : vector<1x128xf32>
    %101 = vector.broadcast %100 : vector<1x128xf32> to vector<32x128xf32>
    %102 = arith.subf %94, %101 : vector<32x128xf32>
    %103 = arith.mulf %102, %102 : vector<32x128xf32>
    %cst_53 = arith.constant dense<0.000000e+00> : vector<128xf32>
    %104 = vector.multi_reduction <add>, %103, %cst_53 [0] : vector<32x128xf32> to vector<128xf32>
    %105 = vector.shape_cast %104 : vector<128xf32> to vector<1x128xf32>
    %cst_54 = arith.constant 3.200000e+01 : f32
    %106 = vector.broadcast %cst_54 : f32 to vector<1x128xf32>
    %107 = arith.divf %105, %106 : vector<1x128xf32>
    %cst_55 = arith.constant 0.000000e+00 : f32
    %108 = vector.broadcast %cst_55 : f32 to vector<1x128xf32>
    %109 = arith.maximumf %107, %108 : vector<1x128xf32>
    %cst_56 = arith.constant 9.99999974E-6 : f32
    %110 = vector.broadcast %cst_56 : f32 to vector<1x128xf32>
    %111 = arith.addf %109, %110 : vector<1x128xf32>
    %112 = math.rsqrt %111 : vector<1x128xf32>
    %113 = arith.mulf %112, %95 : vector<1x128xf32>
    %114 = vector.broadcast %113 : vector<1x128xf32> to vector<32x128xf32>
    %115 = arith.mulf %102, %114 : vector<32x128xf32>
    %116 = vector.broadcast %96 : vector<1x128xf32> to vector<32x128xf32>
    %117 = arith.addf %115, %116 : vector<32x128xf32>
    %118 = arith.addf %92, %117 : vector<32x128xf32>
    %cst_57 = arith.constant 0.000000e+00 : f32
    %119 = vector.broadcast %cst_57 : f32 to vector<32x128xf32>
    %120 = arith.maximumf %118, %119 : vector<32x128xf32>
    %121 = arith.truncf %120 : vector<32x128xf32> to vector<32x128xbf16>
    %c0_58 = arith.constant 0 : index
    %c0_59 = arith.constant 0 : index
    %122 = vector.load %arg13[%c0_58, %c0_59] : memref<128x128xbf16, #tpu.memory_space<vmem>>, vector<128x128xbf16>
    %cst_60 = arith.constant dense<0.000000e+00> : vector<32x128xf32>
    %123 = tpu.matmul %121, %122, %cst_60 {dimension_numbers = #tpu.dot_dimension_numbers<[1], [0], [0], [1], [0, 0, 1, 1], [], []>} : vector<32x128xbf16>, vector<128x128xbf16>, vector<32x128xf32> -> vector<32x128xf32>
    %c0_61 = arith.constant 0 : index
    %c0_62 = arith.constant 0 : index
    %124 = vector.load %arg14[%c0_61, %c0_62] : memref<1x128xf32, #tpu.memory_space<vmem>>, vector<1x128xf32>
    %c0_63 = arith.constant 0 : index
    %c0_64 = arith.constant 0 : index
    %125 = vector.load %arg15[%c0_63, %c0_64] : memref<1x128xf32, #tpu.memory_space<vmem>>, vector<1x128xf32>
    %cst_65 = arith.constant dense<0.000000e+00> : vector<128xf32>
    %126 = vector.multi_reduction <add>, %123, %cst_65 [0] : vector<32x128xf32> to vector<128xf32>
    %127 = vector.shape_cast %126 : vector<128xf32> to vector<1x128xf32>
    %cst_66 = arith.constant 3.200000e+01 : f32
    %128 = vector.broadcast %cst_66 : f32 to vector<1x128xf32>
    %129 = arith.divf %127, %128 : vector<1x128xf32>
    %130 = vector.broadcast %129 : vector<1x128xf32> to vector<32x128xf32>
    %131 = arith.subf %123, %130 : vector<32x128xf32>
    %132 = arith.mulf %131, %131 : vector<32x128xf32>
    %cst_67 = arith.constant dense<0.000000e+00> : vector<128xf32>
    %133 = vector.multi_reduction <add>, %132, %cst_67 [0] : vector<32x128xf32> to vector<128xf32>
    %134 = vector.shape_cast %133 : vector<128xf32> to vector<1x128xf32>
    %cst_68 = arith.constant 3.200000e+01 : f32
    %135 = vector.broadcast %cst_68 : f32 to vector<1x128xf32>
    %136 = arith.divf %134, %135 : vector<1x128xf32>
    %cst_69 = arith.constant 0.000000e+00 : f32
    %137 = vector.broadcast %cst_69 : f32 to vector<1x128xf32>
    %138 = arith.maximumf %136, %137 : vector<1x128xf32>
    %cst_70 = arith.constant 9.99999974E-6 : f32
    %139 = vector.broadcast %cst_70 : f32 to vector<1x128xf32>
    %140 = arith.addf %138, %139 : vector<1x128xf32>
    %141 = math.rsqrt %140 : vector<1x128xf32>
    %142 = arith.mulf %141, %124 : vector<1x128xf32>
    %143 = vector.broadcast %142 : vector<1x128xf32> to vector<32x128xf32>
    %144 = arith.mulf %131, %143 : vector<32x128xf32>
    %145 = vector.broadcast %125 : vector<1x128xf32> to vector<32x128xf32>
    %146 = arith.addf %144, %145 : vector<32x128xf32>
    %cst_71 = arith.constant 0.000000e+00 : f32
    %147 = vector.broadcast %cst_71 : f32 to vector<32x128xf32>
    %148 = arith.maximumf %146, %147 : vector<32x128xf32>
    %149 = vector.shape_cast %148 : vector<32x128xf32> to vector<2x16x128xf32>
    %150 = arith.truncf %149 : vector<2x16x128xf32> to vector<2x16x128xbf16>
    %cst_72 = arith.constant 0.000000e+00 : bf16
    %151 = vector.broadcast %cst_72 : bf16 to vector<2x1x128xbf16>
    %152 = tpu.concatenate %151, %150, %151 in 1 : vector<2x1x128xbf16>, vector<2x16x128xbf16>, vector<2x1x128xbf16> -> vector<2x18x128xbf16>
    %153 = vector.extract_strided_slice %152 {offsets = [0, 0, 0], sizes = [2, 16, 128], strides = [1, 1, 1]} : vector<2x18x128xbf16> to vector<2x16x128xbf16>
    %154 = vector.extract_strided_slice %152 {offsets = [0, 1, 0], sizes = [2, 16, 128], strides = [1, 1, 1]} : vector<2x18x128xbf16> to vector<2x16x128xbf16>
    %155 = vector.extract_strided_slice %152 {offsets = [0, 2, 0], sizes = [2, 16, 128], strides = [1, 1, 1]} : vector<2x18x128xbf16> to vector<2x16x128xbf16>
    %156 = tpu.concatenate %153, %154, %155 in 2 : vector<2x16x128xbf16>, vector<2x16x128xbf16>, vector<2x16x128xbf16> -> vector<2x16x384xbf16>
    %157 = vector.shape_cast %156 : vector<2x16x384xbf16> to vector<32x384xbf16>
    %c0_73 = arith.constant 0 : index
    %c0_74 = arith.constant 0 : index
    %c0_75 = arith.constant 0 : index
    %158 = vector.load %arg16[%c0_73, %c0_74, %c0_75] : memref<3x128x128xbf16, #tpu.memory_space<vmem>>, vector<3x128x128xbf16>
    %159 = vector.shape_cast %158 : vector<3x128x128xbf16> to vector<384x128xbf16>
    %cst_76 = arith.constant dense<0.000000e+00> : vector<32x128xf32>
    %160 = tpu.matmul %157, %159, %cst_76 {dimension_numbers = #tpu.dot_dimension_numbers<[1], [0], [0], [1], [0, 0, 1, 1], [], []>} : vector<32x384xbf16>, vector<384x128xbf16>, vector<32x128xf32> -> vector<32x128xf32>
    %c0_77 = arith.constant 0 : index
    %c0_78 = arith.constant 0 : index
    %161 = vector.load %arg17[%c0_77, %c0_78] : memref<1x128xf32, #tpu.memory_space<vmem>>, vector<1x128xf32>
    %c0_79 = arith.constant 0 : index
    %c0_80 = arith.constant 0 : index
    %162 = vector.load %arg18[%c0_79, %c0_80] : memref<1x128xf32, #tpu.memory_space<vmem>>, vector<1x128xf32>
    %cst_81 = arith.constant dense<0.000000e+00> : vector<128xf32>
    %163 = vector.multi_reduction <add>, %160, %cst_81 [0] : vector<32x128xf32> to vector<128xf32>
    %164 = vector.shape_cast %163 : vector<128xf32> to vector<1x128xf32>
    %cst_82 = arith.constant 3.200000e+01 : f32
    %165 = vector.broadcast %cst_82 : f32 to vector<1x128xf32>
    %166 = arith.divf %164, %165 : vector<1x128xf32>
    %167 = vector.broadcast %166 : vector<1x128xf32> to vector<32x128xf32>
    %168 = arith.subf %160, %167 : vector<32x128xf32>
    %169 = arith.mulf %168, %168 : vector<32x128xf32>
    %cst_83 = arith.constant dense<0.000000e+00> : vector<128xf32>
    %170 = vector.multi_reduction <add>, %169, %cst_83 [0] : vector<32x128xf32> to vector<128xf32>
    %171 = vector.shape_cast %170 : vector<128xf32> to vector<1x128xf32>
    %cst_84 = arith.constant 3.200000e+01 : f32
    %172 = vector.broadcast %cst_84 : f32 to vector<1x128xf32>
    %173 = arith.divf %171, %172 : vector<1x128xf32>
    %cst_85 = arith.constant 0.000000e+00 : f32
    %174 = vector.broadcast %cst_85 : f32 to vector<1x128xf32>
    %175 = arith.maximumf %173, %174 : vector<1x128xf32>
    %cst_86 = arith.constant 9.99999974E-6 : f32
    %176 = vector.broadcast %cst_86 : f32 to vector<1x128xf32>
    %177 = arith.addf %175, %176 : vector<1x128xf32>
    %178 = math.rsqrt %177 : vector<1x128xf32>
    %179 = arith.mulf %178, %161 : vector<1x128xf32>
    %180 = vector.broadcast %179 : vector<1x128xf32> to vector<32x128xf32>
    %181 = arith.mulf %168, %180 : vector<32x128xf32>
    %182 = vector.broadcast %162 : vector<1x128xf32> to vector<32x128xf32>
    %183 = arith.addf %181, %182 : vector<32x128xf32>
    %cst_87 = arith.constant 0.000000e+00 : f32
    %184 = vector.broadcast %cst_87 : f32 to vector<32x128xf32>
    %185 = arith.maximumf %183, %184 : vector<32x128xf32>
    %186 = arith.truncf %185 : vector<32x128xf32> to vector<32x128xbf16>
    %c0_88 = arith.constant 0 : index
    %c0_89 = arith.constant 0 : index
    %187 = vector.load %arg19[%c0_88, %c0_89] : memref<128x128xbf16, #tpu.memory_space<vmem>>, vector<128x128xbf16>
    %cst_90 = arith.constant dense<0.000000e+00> : vector<32x128xf32>
    %188 = tpu.matmul %186, %187, %cst_90 {dimension_numbers = #tpu.dot_dimension_numbers<[1], [0], [0], [1], [0, 0, 1, 1], [], []>} : vector<32x128xbf16>, vector<128x128xbf16>, vector<32x128xf32> -> vector<32x128xf32>
    %c0_91 = arith.constant 0 : index
    %c0_92 = arith.constant 0 : index
    %189 = vector.load %arg20[%c0_91, %c0_92] : memref<1x128xf32, #tpu.memory_space<vmem>>, vector<1x128xf32>
    %c0_93 = arith.constant 0 : index
    %c0_94 = arith.constant 0 : index
    %190 = vector.load %arg21[%c0_93, %c0_94] : memref<1x128xf32, #tpu.memory_space<vmem>>, vector<1x128xf32>
    %cst_95 = arith.constant dense<0.000000e+00> : vector<128xf32>
    %191 = vector.multi_reduction <add>, %188, %cst_95 [0] : vector<32x128xf32> to vector<128xf32>
    %192 = vector.shape_cast %191 : vector<128xf32> to vector<1x128xf32>
    %cst_96 = arith.constant 3.200000e+01 : f32
    %193 = vector.broadcast %cst_96 : f32 to vector<1x128xf32>
    %194 = arith.divf %192, %193 : vector<1x128xf32>
    %195 = vector.broadcast %194 : vector<1x128xf32> to vector<32x128xf32>
    %196 = arith.subf %188, %195 : vector<32x128xf32>
    %197 = arith.mulf %196, %196 : vector<32x128xf32>
    %cst_97 = arith.constant dense<0.000000e+00> : vector<128xf32>
    %198 = vector.multi_reduction <add>, %197, %cst_97 [0] : vector<32x128xf32> to vector<128xf32>
    %199 = vector.shape_cast %198 : vector<128xf32> to vector<1x128xf32>
    %cst_98 = arith.constant 3.200000e+01 : f32
    %200 = vector.broadcast %cst_98 : f32 to vector<1x128xf32>
    %201 = arith.divf %199, %200 : vector<1x128xf32>
    %cst_99 = arith.constant 0.000000e+00 : f32
    %202 = vector.broadcast %cst_99 : f32 to vector<1x128xf32>
    %203 = arith.maximumf %201, %202 : vector<1x128xf32>
    %cst_100 = arith.constant 9.99999974E-6 : f32
    %204 = vector.broadcast %cst_100 : f32 to vector<1x128xf32>
    %205 = arith.addf %203, %204 : vector<1x128xf32>
    %206 = math.rsqrt %205 : vector<1x128xf32>
    %207 = arith.mulf %206, %189 : vector<1x128xf32>
    %208 = vector.broadcast %207 : vector<1x128xf32> to vector<32x128xf32>
    %209 = arith.mulf %196, %208 : vector<32x128xf32>
    %210 = vector.broadcast %190 : vector<1x128xf32> to vector<32x128xf32>
    %211 = arith.addf %209, %210 : vector<32x128xf32>
    %212 = arith.addf %211, %120 : vector<32x128xf32>
    %cst_101 = arith.constant 0.000000e+00 : f32
    %213 = vector.broadcast %cst_101 : f32 to vector<32x128xf32>
    %214 = arith.maximumf %212, %213 : vector<32x128xf32>
    %215 = vector.shape_cast %214 : vector<32x128xf32> to vector<2x16x128xf32>
    %c0_102 = arith.constant 0 : index
    %c0_103 = arith.constant 0 : index
    %c0_104 = arith.constant 0 : index
    %216 = vector.load %arg22[%c0_102, %c0_103, %c0_104] : memref<2x16x128xf32, #tpu.memory_space<vmem>>, vector<2x16x128xf32>
    tpu.vector_store %arg22[%c0_102, %c0_103, %c0_104], %215 {strides = array<i32>} : memref<2x16x128xf32, #tpu.memory_space<vmem>>, vector<2x16x128xf32>,
    return
  }
}

</mosaic_0001>

<bundles_post_ra>
// kernel: _lambda_.1
= control target key start
LH: loop header
LB: loop body
LE: loop exit
PB: predicated region body
PF: predicated region fallthrough
CT: control target
= control target key end

     0   :  { %s2779_s0 = inlined_call_operand.vmem [shape: f32[2,16,128], index: 0, kind: input, shape index: {}]   ;;  %s2780_s1 = inlined_call_operand.hbm [shape: bf16[128,128], index: 1, kind: input, shape index: {}]   ;;  %s2781_s2 = inlined_call_operand.vmem [shape: f32[1,128], index: 2, kind: input, shape index: {}, may-alias: {2,5,14,17}]   ;;  %s2782_s3 = inlined_call_operand.vmem [shape: f32[1,128], index: 3, kind: input, shape index: {}, may-alias: {3,6,9,12,15,18,21}]   ;;  %s2783_s4 = inlined_call_operand.hbm [shape: bf16[3,128,128], index: 4, kind: input, shape index: {}]   ;;  %s2784_s5 = inlined_call_operand.vmem [shape: f32[1,128], index: 5, kind: input, shape index: {}, may-alias: {2,5,14,17}]   ;;  %s2785_s6 = inlined_call_operand.vmem [shape: f32[1,128], index: 6, kind: input, shape index: {}, may-alias: {3,6,9,12,15,18,21}]   ;;  %s2786_s7 = inlined_call_operand.hbm [shape: bf16[128,128], index: 7, kind: input, shape index: {}]   ;;  %s2787_s8 = inlined_call_operand.vmem [shape: f32[1,128], index: 8, kind: input, shape index: {}, may-alias: {8,11,20}]   ;;  %s2788_s9 = inlined_call_operand.vmem [shape: f32[1,128], index: 9, kind: input, shape index: {}, may-alias: {3,6,9,12,15,18,21}]   ;;  %s2789_s10 = inlined_call_operand.hbm [shape: bf16[128,128], index: 10, kind: input, shape index: {}]   ;;  %s2790_s11 = inlined_call_operand.vmem [shape: f32[1,128], index: 11, kind: input, shape index: {}, may-alias: {8,11,20}]   ;;  %s2791_s12 = inlined_call_operand.vmem [shape: f32[1,128], index: 12, kind: input, shape index: {}, may-alias: {3,6,9,12,15,18,21}]   ;;  %s2792_s13 = inlined_call_operand.hbm [shape: bf16[128,128], index: 13, kind: input, shape index: {}]   ;;  %s2793_s14 = inlined_call_operand.vmem [shape: f32[1,128], index: 14, kind: input, shape index: {}, may-alias: {2,5,14,17}]   ;;  %s2794_s15 = inlined_call_operand.vmem [shape: f32[1,128], index: 15, kind: input, shape index: {}, may-alias: {3,6,9,12,15,18,21}]   ;;  %s2795_s16 = inlined_call_operand.hbm [shape: bf16[3,128,128], index: 16, kind: input, shape index: {}]   ;;  %s2796_s17 = inlined_call_operand.vmem [shape: f32[1,128], index: 17, kind: input, shape index: {}, may-alias: {2,5,14,17}]   ;;  %s2797_s18 = inlined_call_operand.vmem [shape: f32[1,128], index: 18, kind: input, shape index: {}, may-alias: {3,6,9,12,15,18,21}]   ;;  %s2798_s19 = inlined_call_operand.vmem [shape: bf16[128,128], index: 19, kind: input, shape index: {}]   ;;  %s2799_s20 = inlined_call_operand.vmem [shape: f32[1,128], index: 20, kind: input, shape index: {}, may-alias: {8,11,20}]   ;;  %s2800_s21 = inlined_call_operand.vmem [shape: f32[1,128], index: 21, kind: input, shape index: {}, may-alias: {3,6,9,12,15,18,21}]   ;;  %s2801_s22 = inlined_call_operand.vmem [shape: f32[2,16,128], index: 22, kind: output, shape index: {}]  }
   0x1   :  { %2803 = sst [smem:[#allocation16_spill]] %s2779_s0 }
   0x2   :  { %2804 = sst [smem:[#allocation17_spill]] %s2780_s1 }
   0x3   :  { %2805 = sst [smem:[#allocation18_spill]] %s2781_s2 }
   0x4   :  { %2806 = sst [smem:[#allocation19_spill]] %s2782_s3 }
   0x5   :  { %2807 = sst [smem:[#allocation20_spill]] %s2783_s4 }
   0x6   :  { %2808 = sst [smem:[#allocation21_spill]] %s2784_s5 }
   0x7   :  { %2809 = sst [smem:[#allocation22_spill]] %s2785_s6 }
   0x8   :  { %27 = vsyncpa [#allocation3], 0 }
   0x9   :  { %28 = vsyncpa [#allocation5], 0 }
   0xa   :  { %29 = vsyncpa [#allocation8], 0 }
   0xb   :  { %30 = vsyncpa [#allocation11], 0  ;;  %s2448_s3 = smov [#allocation4]   ;;  %s2449_s29 = smov [#allocation7]  }
   0xc   :  { %s54_s28 = sshll.u32 %s2448_s3, 4  ;;  %s86_s30 = sshll.u32 %s2449_s29, 4  ;;  %s55_s28 = int_to_ptr.vmem [resolvable:$true] %s54_s28  ;;  %s87_s30 = int_to_ptr.vmem [resolvable:$true] %s86_s30 }
   0xd   :  { %s2328_s4 = scalar_lea.vmem %s55_s28, 3072  ;;  %p2333_p1 = scmp.lt.s32.totalorder %s55_s28, %s55_s28 }
   0xe   :  { %p2329_p0 = scmp.ne.s32.totalorder %s55_s28, %s2328_s4  ;;  %p2334_p2 = scmp.lt.s32.totalorder %s2328_s4, %s2328_s4 }
  0x10   :  { %p2335_p3 = por %p2334_p2, %p2333_p1 }
  0x12   :  { %p2336_p4 = pnand %p2335_p3, %p2329_p0 }
  0x14   :  { %2339 = shalt.err (!%p2336_p4)
}
  0x15   :  { %s2450_s0 = smov 64   ;;  %s2451_s23 = smov 4  }
  0x16   :  { %s2810_s24 = sld [smem:[#allocation20_spill]]  ;;  %s2348_s6 = scalar_lea.vmem %s87_s30, 1024 }
  0x17   :  { %p2349_p5 = scmp.ne.s32.totalorder %s87_s30, %s2348_s6  ;;  %p2353_p6 = scmp.lt.s32.totalorder %s87_s30, %s87_s30 }
  0x18   :  { %p2354_p7 = scmp.lt.s32.totalorder %s2348_s6, %s2348_s6 }
  0x1a   :  { %p2355_p8 = por %p2354_p7, %p2353_p6 }
  0x1c   :  { %60 = dma.hbm_to_vmem [thread:$0]  %s2810_s24, 3072, %s55_s28, [#allocation5], %s2450_s0, %s2450_s0, %s2451_s23  }
  0x1d   :  { %p2356_p9 = pnand %p2355_p8, %p2349_p5 }
  0x1f   :  { %2359 = shalt.err (!%p2356_p9)
}
  0x20   :  { %92 = dma.hbm_to_vmem [thread:$0]  %s2789_s10, 1024, %s87_s30, [#allocation8], %s2450_s0, %s2450_s0, %s2451_s23  }
  0x21   :  { %s2452_s2 = smov [#allocation2]   ;;  %s2453_s3 = smov [#allocation6]  }
  0x22   :  { %s38_s27 = sshll.u32 %s2452_s2, 4  ;;  %s70_s29 = sshll.u32 %s2453_s3, 4  ;;  %s39_s27 = int_to_ptr.vmem [resolvable:$true] %s38_s27  ;;  %s71_s29 = int_to_ptr.vmem [resolvable:$true] %s70_s29 }
  0x23   :  { %s2368_s28 = scalar_lea.vmem %s39_s27, 1024  ;;  %p2373_p11 = scmp.lt.s32.totalorder %s39_s27, %s39_s27 }
  0x24   :  { %p2369_p10 = scmp.ne.s32.totalorder %s39_s27, %s2368_s28  ;;  %p2374_p12 = scmp.lt.s32.totalorder %s2368_s28, %s2368_s28 }
  0x26   :  { %p2375_p13 = por %p2374_p12, %p2373_p11 }
  0x28   :  { %p2376_p0 = pnand %p2375_p13, %p2369_p10 }
  0x2a   :  { %2379 = shalt.err (!%p2376_p0)
}
  0x2b   :  { %s2811_s5 = sld [smem:[#allocation17_spill]]  ;;  %s2388_s10 = scalar_lea.vmem %s71_s29, 1024 }
  0x2c   :  { %p2389_p1 = scmp.ne.s32.totalorder %s71_s29, %s2388_s10  ;;  %p2393_p2 = scmp.lt.s32.totalorder %s71_s29, %s71_s29 }
  0x2d   :  { %p2394_p3 = scmp.lt.s32.totalorder %s2388_s10, %s2388_s10 }
  0x2f   :  { %p2395_p4 = por %p2394_p3, %p2393_p2 }
  0x31   :  { %44 = dma.hbm_to_vmem [thread:$0]  %s2811_s5, 1024, %s39_s27, [#allocation3], %s2450_s0, %s2450_s0, %s2451_s23  }
  0x32   :  { %p2396_p5 = pnand %p2395_p4, %p2389_p1 }
  0x34   :  { %2399 = shalt.err (!%p2396_p5)
}
  0x35   :  { %76 = dma.hbm_to_vmem [thread:$0]  %s2786_s7, 1024, %s71_s29, [#allocation5], %s2450_s0, %s2450_s0, %s2451_s23  }
  0x36   :  { %s2454_s6 = smov [#allocation9]   ;;  %s2455_s26 = smov [#allocation10]  }
  0x37   :  { %s102_s25 = sshll.u32 %s2454_s6, 4  ;;  %s118_s2 = sshll.u32 %s2455_s26, 4  ;;  %s103_s25 = int_to_ptr.vmem [resolvable:$true] %s102_s25  ;;  %s119_s2 = int_to_ptr.vmem [resolvable:$true] %s118_s2 }
  0x38   :  { %s2408_s27 = scalar_lea.vmem %s103_s25, 1024  ;;  %p2413_p7 = scmp.lt.s32.totalorder %s103_s25, %s103_s25 }
  0x39   :  { %p2409_p6 = scmp.ne.s32.totalorder %s103_s25, %s2408_s27  ;;  %p2414_p8 = scmp.lt.s32.totalorder %s2408_s27, %s2408_s27 }
  0x3b   :  { %p2415_p9 = por %p2414_p8, %p2413_p7 }
  0x3d   :  { %p2416_p10 = pnand %p2415_p9, %p2409_p6 }
  0x3f   :  { %2419 = shalt.err (!%p2416_p10)
}
  0x40   :  { %108 = dma.hbm_to_vmem [thread:$0]  %s2792_s13, 1024, %s103_s25, [#allocation8], %s2450_s0, %s2450_s0, %s2451_s23  }
  0x41   :  { %s2428_s7 = scalar_lea.vmem %s119_s2, 3072  ;;  %p2433_p12 = scmp.lt.s32.totalorder %s119_s2, %s119_s2 }
  0x42   :  { %p2429_p11 = scmp.ne.s32.totalorder %s119_s2, %s2428_s7  ;;  %p2434_p13 = scmp.lt.s32.totalorder %s2428_s7, %s2428_s7 }
  0x44   :  { %p2435_p0 = por %p2434_p13, %p2433_p12 }
  0x46   :  { %p2436_p1 = pnand %p2435_p0, %p2429_p11 }
  0x48   :  { %2439 = shalt.err (!%p2436_p1)
}
  0x49   :  { %124 = dma.hbm_to_vmem [thread:$0]  %s2795_s16, 3072, %s119_s2, [#allocation11], %s2450_s0, %s2450_s0, %s2451_s23  }
  0x4a   :  { %2440 = dma.done.wait [#allocation3], 1024  }
  0x4b   :  { %2441 = vsyncadd [#allocation3], 4294966272 }
  0x4c   :  { %2442 = dma.done.wait [#allocation5], 4096  }
  0x4d   :  { %2443 = vsyncadd [#allocation5], 4294963200 }
  0x4e   :  { %2444 = dma.done.wait [#allocation8], 2048  }
  0x4f   :  { %2445 = vsyncadd [#allocation8], 4294965248 }
  0x50   :  { %2446 = dma.done.wait [#allocation11], 3072  }
  0x51   :  { %2447 = vsyncadd [#allocation11], 4294964224  ;;  %v2218_v0 = vld [vmem:[#allocation2 + $0x38] sm:$0xff]   ;;  %v2219_v1 = vld [vmem:[#allocation2 + $0x30] sm:$0xff]   ;;  %s2812_s16 = sld [smem:[#allocation16_spill]]  ;;  %vm350_vm0 = vcmask 1040384  }
  0x52   :  { %2070 = vmatprep.subr.bf16.mxu0 %v2218_v0  ;;  %v2220_v2 = vld [vmem:[#allocation2 + $0x28] sm:$0xff]   ;;  %v2221_v3 = vld [vmem:[#allocation2 + $0x20] sm:$0xff]   ;;  %v2222_v7 = vld [vmem:[#allocation2 + $0x18] sm:$0xff]   ;;  %s2813_s26 = sld [smem:[#allocation18_spill]]  ;;  %vm351_vm1 = vsmask.f32 256 }
  0x53   :  { %2071 = vmatpush3.bf16.msra.mxu0 %v2218_v0  ;;  %v2223_v8 = vld [vmem:[#allocation2 + $0x10] sm:$0xff]   ;;  %v2224_v9 = vld [vmem:[#allocation2 + $0x8] sm:$0xff]   ;;  %v2225_v10 = vld [vmem:[#allocation2] sm:$0xff]   ;;  %s2814_s3 = sld [smem:[#allocation19_spill]]  ;;  %vm388_vm3 = vcmask 1046528  }
  0x54   :  { %2072 = vmatprep.subr.bf16.mxu0 %v2219_v1  ;;  %v2226_v14 = vld [vmem:[#allocation4 + $0xb8] sm:$0xff]   ;;  %v2228_v16 = vld [vmem:[#allocation4 + $0xb0] sm:$0xff]   ;;  %v2231_v19 = vld [vmem:[#allocation4 + $0xa8] sm:$0xff]   ;;  %vm357_vm4 = vsmask.f32 7424  ;;  %s2817_s29 = sld [smem:[#allocation21_spill]] }
  0x55   :  { %v2227_v15 = vld [vmem:[#allocation4 + $0x78] sm:$0xff]   ;;  %v2230_v18 = vld [vmem:[#allocation4 + $0x70] sm:$0xff]   ;;  %v2233_v21 = vld [vmem:[#allocation4 + $0x68] sm:$0xff]   ;;  %s2818_s1 = sld [smem:[#allocation22_spill]] }
  0x56   :  { %v2229_v17 = vld [vmem:[#allocation4 + $0x38] sm:$0xff]   ;;  %1954 = vmatprep.subr.bf16.mxu1 %v2227_v15  ;;  %v2232_v20 = vld [vmem:[#allocation4 + $0x30] sm:$0xff]   ;;  %v2234_v22 = vld [vmem:[#allocation4 + $0xa0] sm:$0xff]  }
  0x57   :  { %2073 = vmatpush3.bf16.msra.mxu0 %v2219_v1  ;;  %v154_v4 = vld [vmem:[%s2812_s16] sm:$0xff]  ;;  %v155_v5 = vld [vmem:[%s2812_s16 + $0x8] sm:$0xff]  ;;  %v156_v11 = vld [vmem:[%s2812_s16 + $0x10] sm:$0xff]  ;;  %1955 = vmatpush3.bf16.msra.mxu1 %v2229_v17 }
  0x58   :  { %2074 = vmatprep.subr.bf16.mxu0 %v2220_v2  ;;  %v2613_v6 = vpack.c.bf16 %v155_v5, %v154_v4  ;;  %v157_v12 = vld [vmem:[%s2812_s16 + $0x18] sm:$0xff]  ;;  %1956 = vmatprep.subr.bf16.mxu1 %v2230_v18  ;;  %v2235_v23 = vld [vmem:[#allocation4 + $0x28] sm:$0xff]   ;;  %v2236_v24 = vld [vmem:[#allocation4 + $0x60] sm:$0xff]  }
  0x59   :  { %v2622_v13 = vpack.c.bf16 %v157_v12, %v156_v11  ;;  %v2237_v25 = vld [vmem:[#allocation4 + $0x98] sm:$0xff]   ;;  %v2238_v26 = vld [vmem:[#allocation4 + $0x20] sm:$0xff]   ;;  %v2240_v28 = vld [vmem:[#allocation4 + $0x90] sm:$0xff]  }
  0x5a   :  { %2086 = vmatprep.mubr.bf16.mxu0 %v2613_v6  ;;  %v2239_v27 = vld [vmem:[#allocation4 + $0x58] sm:$0xff]   ;;  %v2242_v30 = vld [vmem:[#allocation4 + $0x50] sm:$0xff]   ;;  %v2243_v31 = vld [vmem:[#allocation4 + $0x88] sm:$0xff]  }
  0x5b   :  { %2075 = vmatpush3.bf16.msra.mxu0 %v2220_v2  ;;  %1957 = vmatpush3.bf16.msra.mxu1 %v2232_v20  ;;  %v2241_v29 = vld [vmem:[#allocation4 + $0x18] sm:$0xff]   ;;  %v2244_v32 = vld [vmem:[#allocation4 + $0x10] sm:$0xff]   ;;  %v2245_v33 = vld [vmem:[#allocation4 + $0x48] sm:$0xff]  }
  0x5c   :  { %2076 = vmatprep.subr.bf16.mxu0 %v2221_v3  ;;  %1958 = vmatprep.subr.bf16.mxu1 %v2233_v21  ;;  %v2246_v34 = vld [vmem:[#allocation4 + $0x80] sm:$0xff]   ;;  %v2247_v35 = vld [vmem:[#allocation4 + $0x8] sm:$0xff]   ;;  %v2625_v38 = vld [vmem:[#allocation7 + $0x38] sm:$0xff]  }
  0x5d   :  { %v2248_v36 = vld [vmem:[#allocation4 + $0x40] sm:$0xff]   ;;  %vm2637_vm2 = vmand %vm350_vm0, %vm351_vm1 }
  0x5e   :  { %v2249_v37 = vld [vmem:[#allocation4] sm:$0xff]  }
  0x5f   :  { %2077 = vmatpush3.bf16.msra.mxu0 %v2221_v3  ;;  %1959 = vmatpush3.bf16.msra.mxu1 %v2235_v23  ;;  %v273_v12 = vld [vmem:[%s2813_s26] sm:$0x1] }
  0x60   :  { %2078 = vmatprep.subr.bf16.mxu0 %v2222_v7  ;;  %1960 = vmatprep.subr.bf16.mxu1 %v2236_v24  ;;  %v1857_v18 = vld [vmem:[%s2814_s3] ss:$0 sm:$0xff] }
  0x63   :  { %2079 = vmatpush3.bf16.msra.mxu0 %v2222_v7  ;;  %1961 = vmatpush3.bf16.msra.mxu1 %v2238_v26 }
  0x64   :  { %2080 = vmatprep.subr.bf16.mxu0 %v2223_v8  ;;  %1962 = vmatprep.subr.bf16.mxu1 %v2239_v27 }
  0x67   :  { %2081 = vmatpush3.bf16.msra.mxu0 %v2223_v8  ;;  %1963 = vmatpush3.bf16.msra.mxu1 %v2241_v29 }
  0x68   :  { %2082 = vmatprep.subr.bf16.mxu0 %v2224_v9  ;;  %1964 = vmatprep.subr.bf16.mxu1 %v2242_v30 }
  0x6b   :  { %2083 = vmatpush3.bf16.msra.mxu0 %v2224_v9  ;;  %1965 = vmatpush3.bf16.msra.mxu1 %v2244_v32 }
  0x6c   :  { %2084 = vmatprep.subr.bf16.mxu0 %v2225_v10  ;;  %1966 = vmatprep.subr.bf16.mxu1 %v2245_v33 }
  0x6f   :  { %2085 = vmatpush3.bf16.msra.mxu0 %v2225_v10  ;;  %1967 = vmatpush3.bf16.msra.mxu1 %v2247_v35  ;;  %v308_v10 = vlaneseq }
  0x70   :  { %2090 = vmatprep.subr.bf16.mxu0 %v2226_v14  ;;  %1968 = vmatprep.subr.bf16.mxu1 %v2248_v36 }
  0x71   :  { %v309_v11 = vshrl.u32 %v308_v10, 7  ;;  %v2259_v10 = vld [vmem:[#allocation6 + $0x30] sm:$0xff]  }
  0x72   :  { %2087 = vmatmul.mubr.bf16.vlgmr.msra.gmra.mxu0 %v2622_v13 }
  0x73   :  { %2091 = vmatpush3.bf16.msra.mxu0 %v2226_v14  ;;  %1969 = vmatpush3.bf16.msra.mxu1 %v2249_v37  ;;  %v2631_v14 = vsub.s32 0, %v309_v11  ;;  %v2260_v11 = vld [vmem:[#allocation6 + $0x28] sm:$0xff]  }
  0x74   :  { %2092 = vmatprep.subr.bf16.mxu0 %v2228_v16 }
  0x77   :  { %2093 = vmatpush3.bf16.msra.mxu0 %v2228_v16 }
  0x78   :  { %2094 = vmatprep.subr.bf16.mxu0 %v2231_v19 }
  0x7b   :  { %2095 = vmatpush3.bf16.msra.mxu0 %v2231_v19 }
  0x7c   :  { %2096 = vmatprep.subr.bf16.mxu0 %v2234_v22 }
  0x7f   :  { %2097 = vmatpush3.bf16.msra.mxu0 %v2234_v22 }
  0x80   :  { %2098 = vmatprep.subr.bf16.mxu0 %v2237_v25 }
  0x83   :  { %2099 = vmatpush3.bf16.msra.mxu0 %v2237_v25 }
  0x84   :  { %2100 = vmatprep.subr.bf16.mxu0 %v2240_v28 }
  0x87   :  { %2101 = vmatpush3.bf16.msra.mxu0 %v2240_v28 }
  0x88   :  { %2102 = vmatprep.subr.bf16.mxu0 %v2243_v31 }
  0x8b   :  { %2103 = vmatpush3.bf16.msra.mxu0 %v2243_v31 }
  0x8c   :  { %2104 = vmatprep.subr.bf16.mxu0 %v2246_v34 }
  0x8f   :  { %2105 = vmatpush3.bf16.msra.mxu0 %v2246_v34 }
  0x90   :  { %2130 = vmatprep.subr.bf16.mxu0 %v2625_v38 }
 0x132   :  { %v2088_v39 = vpop.f32.mrf.mxu0 }
 0x134   :  { %v258_v40 = vpop.f32.mrf.mxu0 }
 0x136   :  { %v2089_v41 = vpop.f32.mrf.mxu0 }
 0x138   :  { %v261_v42 = vpop.f32.mrf.mxu0 }
 0x139   :  { %v275_v43 = vadd.f32 %v261_v42, %v258_v40 }
 0x13b   :  { %v276_v44 = vadd.f32 %v2088_v39, %v275_v43 }
 0x13d   :  { %v277_v45 = vadd.f32 %v2089_v41, %v276_v44 }
 0x13f   :  { %v278_v46 = vrot.slane %v277_v45, 4 }
 0x141   :  { %v279_v47 = vadd.f32 %v278_v46, %v277_v45 }
 0x143   :  { %v280_v48 = vrot.slane %v279_v47, 2 }
 0x145   :  { %v281_v49 = vadd.f32 %v280_v48, %v279_v47 }
 0x147   :  { %v282_v50 = vrot.slane %v281_v49, 1 }
 0x149   :  { %v283_v51 = vadd.f32 %v282_v50, %v281_v49 }
 0x14b   :  { %v285_v52 = vmul.f32 0.03125, %v283_v51 }
 0x14d   :  { %v286_v53 = vsub.f32 %v258_v40, %v285_v52  ;;  %v287_v54 = vsub.f32 %v261_v42, %v285_v52  ;;  %v288_v55 = vsub.f32 %v2088_v39, %v285_v52  ;;  %v289_v56 = vsub.f32 %v2089_v41, %v285_v52 }
 0x14f   :  { %v290_v57 = vmul.f32 %v286_v53, %v286_v53  ;;  %v291_v58 = vmul.f32 %v287_v54, %v287_v54  ;;  %v292_v59 = vmul.f32 %v288_v55, %v288_v55  ;;  %v293_v61 = vmul.f32 %v289_v56, %v289_v56 }
 0x151   :  { %v294_v60 = vadd.f32 %v291_v58, %v290_v57 }
 0x153   :  { %v295_v62 = vadd.f32 %v294_v60, %v292_v59  ;;  %v2251_v59 = vld [vmem:[#allocation7 + $0x30] sm:$0xff]  }
 0x155   :  { %v296_v63 = vadd.f32 %v295_v62, %v293_v61 }
 0x157   :  { %v297_v0 = vrot.slane %v296_v63, 4 }
 0x159   :  { %v298_v1 = vadd.f32 %v297_v0, %v296_v63 }
 0x15b   :  { %v299_v2 = vrot.slane %v298_v1, 2 }
 0x15d   :  { %v300_v3 = vadd.f32 %v299_v2, %v298_v1 }
 0x15f   :  { %v301_v4 = vrot.slane %v300_v3, 1 }
 0x161   :  { %v302_v5 = vadd.f32 %v301_v4, %v300_v3  ;;  %v2252_v4 = vld [vmem:[#allocation7 + $0x28] sm:$0xff]  }
 0x163   :  { %v303_v7 = vmul.f32 0.03125, %v302_v5  ;;  %v2253_v5 = vld [vmem:[#allocation7 + $0x20] sm:$0xff]  }
 0x165   :  { %v304_v8 = vmax.f32 %v303_v7, 0.0  ;;  %v2256_v7 = vld [vmem:[#allocation7 + $0x8] sm:$0xff]  }
 0x167   :  { %v305_v9 = vadd.f32 1e-05, %v304_v8  ;;  %v2257_v8 = vld [vmem:[#allocation7] sm:$0xff]  }
 0x169   :  { %2306 = vrsqrt.f32 %v305_v9  ;;  %v2258_v9 = vld [vmem:[#allocation6 + $0x38] sm:$0xff]  }
 0x16a   :  { %2110 = vmatprep.subr.bf16.mxu1 %v2258_v9 }
 0x176   :  { %v2307_v15 = vpop.eup %2306 }
 0x177   :  { %v307_v16 = vmul.f32 %v2307_v15, %v273_v12  ;;  %v2261_v12 = vld [vmem:[#allocation6 + $0x20] sm:$0xff]   ;;  %v2262_v15 = vld [vmem:[#allocation6 + $0x18] sm:$0xff]  }
 0x179   :  { %v311_v17 = vrot.slane %v307_v16, %v2631_v14  ;;  %v2263_v16 = vld [vmem:[#allocation6 + $0x10] sm:$0xff]  }
 0x17b   :  { %v312_v19 = vmul.f32 %v311_v17, %v286_v53  ;;  %v313_v20 = vmul.f32 %v311_v17, %v287_v54  ;;  %v314_v21 = vmul.f32 %v311_v17, %v288_v55  ;;  %v315_v22 = vmul.f32 %v311_v17, %v289_v56  ;;  %v2264_v17 = vld [vmem:[#allocation6 + $0x8] sm:$0xff]  }
 0x17d   :  { %v322_v23 = vadd.f32 %v1857_v18, %v312_v19  ;;  %v323_v24 = vadd.f32 %v1857_v18, %v313_v20  ;;  %v324_v25 = vadd.f32 %v1857_v18, %v314_v21  ;;  %v325_v26 = vadd.f32 %v1857_v18, %v315_v22 }
 0x17f   :  { %v326_v27 = vmax.f32 %v322_v23, 0.0  ;;  %v327_v28 = vmax.f32 %v323_v24, 0.0  ;;  %v328_v29 = vmax.f32 %v324_v25, 0.0  ;;  %v329_v30 = vmax.f32 %v325_v26, 0.0 }
 0x181   :  { %v330_v31 = vpack.c.bf16 %v327_v28, %v326_v27  ;;  %v331_v32 = vpack.c.bf16 %v329_v30, %v328_v29 }
 0x183   :  { %v333_v33 = vshrl.u32 %v330_v31, 16  ;;  %v340_v34 = vshrl.u32 %v331_v32, 16  ;;  %v336_v36 = vshll.u32 %v330_v31, 16  ;;  %v343_v40 = vshll.u32 %v331_v32, 16 }
 0x185   :  { %v335_v37 = vrot.slane %v333_v33, 7  ;;  %v342_v39 = vrot.slane %v340_v34, 7 }
 0x187   :  { %v338_v41 = vor.u32 %v336_v36, %v335_v37  ;;  %v355_v42 = vsel %vm2637_vm2, %v335_v37, 0  ;;  %v345_v43 = vor.u32 %v343_v40, %v342_v39  ;;  %v356_v44 = vsel %vm2637_vm2, %v342_v39, 0 }
 0x188   :  { %v390_v46 = vrot.slane %v355_v42, 1  ;;  %v393_v48 = vrot.slane %v356_v44, 1  ;;  %v366_v52 = vshll.u32 %v355_v42, 16  ;;  %v378_v54 = vshll.u32 %v356_v44, 16 }
 0x189   :  { %v353_v45 = vsel %vm2637_vm2, 0, %v338_v41  ;;  %v354_v47 = vsel %vm2637_vm2, 0, %v345_v43 }
 0x18a   :  { %v389_v49 = vrot.slane %v353_v45, 1  ;;  %v392_v50 = vrot.slane %v354_v47, 1  ;;  %v361_v51 = vshll.u32 %v353_v45, 16  ;;  %v373_v53 = vshll.u32 %v354_v47, 16 }
 0x18b   :  { %v359_v57 = vshrl.u32 %v353_v45, 16  ;;  %v371_v60 = vshrl.u32 %v354_v47, 16  ;;  %v368_v63 = vrot.slane %v366_v52, 1  ;;  %v380_v2 = vrot.slane %v378_v54, 1 }
 0x18c   :  { %v391_v55 = vsel %vm388_vm3, %v389_v49, %v390_v46  ;;  %v394_v56 = vsel %vm388_vm3, %v392_v50, %v393_v48  ;;  %v363_v58 = vrot.slane %v361_v51, 1  ;;  %v375_v61 = vrot.slane %v373_v53, 1 }
 0x18d   :  { %2106 = vmatprep.mubr.bf16.mxu0 %v391_v55 }
 0x18e   :  { %2107 = vmatmul.mubr.bf16.vlgmr.msra.gmra.mxu0 %v394_v56  ;;  %v364_v62 = vor.u32 %v363_v58, %v359_v57  ;;  %v376_v0 = vor.u32 %v375_v61, %v371_v60 }
 0x18f   :  { %2131 = vmatpush3.bf16.msra.mxu0 %v2625_v38  ;;  %2146 = vmatprep.mubr.bf16.mxu0 %v2613_v6  ;;  %v2254_v38 = vld [vmem:[#allocation7 + $0x18] sm:$0xff]   ;;  %v2255_v6 = vld [vmem:[#allocation7 + $0x10] sm:$0xff]  }
 0x190   :  { %v369_v1 = vsel %vm357_vm4, %v364_v62, %v368_v63  ;;  %2132 = vmatprep.subr.bf16.mxu0 %v2251_v59  ;;  %v381_v3 = vsel %vm357_vm4, %v376_v0, %v380_v2 }
 0x191   :  { %621 = vmatprep.mubr.bf16.mxu1 %v369_v1 }
 0x192   :  { %622 = vmatmul.mubr.bf16.vlgmr.msra.gmra.mxu1 %v353_v45 }
 0x193   :  { %629 = vmatprep.mubr.bf16.mxu1 %v381_v3  ;;  %2133 = vmatpush3.bf16.msra.mxu0 %v2251_v59 }
 0x194   :  { %2134 = vmatprep.subr.bf16.mxu0 %v2252_v4  ;;  %2111 = vmatpush3.bf16.msra.mxu1 %v2258_v9  ;;  %v1882_v9 = vld [vmem:[%s2818_s1] ss:$0 sm:$0xff] }
 0x195   :  { %2112 = vmatprep.subr.bf16.mxu1 %v2259_v10 }
 0x197   :  { %2135 = vmatpush3.bf16.msra.mxu0 %v2252_v4 }
 0x198   :  { %2136 = vmatprep.subr.bf16.mxu0 %v2253_v5  ;;  %2113 = vmatpush3.bf16.msra.mxu1 %v2259_v10 }
 0x199   :  { %2114 = vmatprep.subr.bf16.mxu1 %v2260_v11 }
 0x19a   :  { %630 = vmatmul.mubr.bf16.gmra.mxu1 %v354_v47 }
 0x19b   :  { %2137 = vmatpush3.bf16.msra.mxu0 %v2253_v5 }
 0x19c   :  { %2138 = vmatprep.subr.bf16.mxu0 %v2254_v38  ;;  %2115 = vmatpush3.bf16.msra.mxu1 %v2260_v11 }
 0x19d   :  { %2116 = vmatprep.subr.bf16.mxu1 %v2261_v12 }
 0x19f   :  { %2139 = vmatpush3.bf16.msra.mxu0 %v2254_v38  ;;  %v687_v38 = vld [vmem:[%s2817_s29] sm:$0x1] }
 0x1a0   :  { %2140 = vmatprep.subr.bf16.mxu0 %v2255_v6  ;;  %2117 = vmatpush3.bf16.msra.mxu1 %v2261_v12 }
 0x1a1   :  { %2118 = vmatprep.subr.bf16.mxu1 %v2262_v15 }
 0x1a3   :  { %2141 = vmatpush3.bf16.msra.mxu0 %v2255_v6 }
 0x1a4   :  { %2142 = vmatprep.subr.bf16.mxu0 %v2256_v7  ;;  %2119 = vmatpush3.bf16.msra.mxu1 %v2262_v15 }
 0x1a5   :  { %2120 = vmatprep.subr.bf16.mxu1 %v2263_v16 }
 0x1a7   :  { %2143 = vmatpush3.bf16.msra.mxu0 %v2256_v7 }
 0x1a8   :  { %2144 = vmatprep.subr.bf16.mxu0 %v2257_v8  ;;  %2121 = vmatpush3.bf16.msra.mxu1 %v2263_v16 }
 0x1a9   :  { %2122 = vmatprep.subr.bf16.mxu1 %v2264_v17 }
 0x1ab   :  { %2145 = vmatpush3.bf16.msra.mxu0 %v2257_v8 }
 0x1ac   :  { %2123 = vmatpush3.bf16.msra.mxu1 %v2264_v17 }
 0x1ae   :  { %2147 = vmatmul.mubr.bf16.vlgmr.msra.gmra.mxu0 %v2622_v13  ;;  %v2265_v13 = vld [vmem:[#allocation6] sm:$0xff]  }
 0x1af   :  { %2124 = vmatprep.subr.bf16.mxu1 %v2265_v13 }
 0x1b0   :  { %2125 = vmatpush3.bf16.msra.mxu1 %v2265_v13 }
 0x24e   :  { %v2108_v18 = vpop.f32.mrf.mxu0 }
 0x250   :  { %v672_v20 = vpop.f32.mrf.mxu0 }
 0x252   :  { %v1970_v19 = vpop.f32.mrf.mxu1  ;;  %v2109_v23 = vpop.f32.mrf.mxu0 }
 0x254   :  { %v1971_v21 = vpop.f32.mrf.mxu1  ;;  %v675_v28 = vpop.f32.mrf.mxu0 }
 0x255   :  { %v1972_v27 = vadd.f32 %v1971_v21, %v1970_v19 }
 0x256   :  { %v1973_v22 = vpop.f32.mrf.mxu1 }
 0x257   :  { %v673_v33 = vadd.f32 %v1972_v27, %v672_v20  ;;  %v2268_v27 = vld [vmem:[#allocation9 + $0x28] sm:$0xff]  }
 0x258   :  { %v1974_v24 = vpop.f32.mrf.mxu1 }
 0x259   :  { %v1975_v25 = vadd.f32 %v1974_v24, %v1973_v22 }
 0x25a   :  { %v1976_v26 = vpop.f32.mrf.mxu1 }
 0x25b   :  { %v676_v30 = vadd.f32 %v1975_v25, %v675_v28  ;;  %v2266_v25 = vld [vmem:[#allocation9 + $0x38] sm:$0xff]  }
 0x25c   :  { %v1977_v29 = vpop.f32.mrf.mxu1  ;;  %2150 = vmatprep.subr.bf16.mxu1 %v2266_v25 }
 0x25d   :  { %v1978_v31 = vadd.f32 %v1977_v29, %v1976_v26  ;;  %v689_v37 = vadd.f32 %v676_v30, %v673_v33  ;;  %v2267_v26 = vld [vmem:[#allocation9 + $0x30] sm:$0xff]   ;;  %v2269_v29 = vld [vmem:[#allocation9 + $0x20] sm:$0xff]  }
 0x25e   :  { %v1979_v32 = vpop.f32.mrf.mxu1 }
 0x25f   :  { %v681_v34 = vadd.f32 %v2108_v18, %v1978_v31  ;;  %v2270_v31 = vld [vmem:[#allocation9 + $0x18] sm:$0xff]  }
 0x260   :  { %v1980_v36 = vpop.f32.mrf.mxu1 }
 0x261   :  { %v1981_v39 = vadd.f32 %v1980_v36, %v1979_v32  ;;  %v690_v40 = vadd.f32 %v689_v37, %v681_v34  ;;  %v2272_v36 = vld [vmem:[#allocation9 + $0x8] sm:$0xff]   ;;  %v2273_v37 = vld [vmem:[#allocation9] sm:$0xff]  }
 0x263   :  { %v684_v41 = vadd.f32 %v2109_v23, %v1981_v39 }
 0x265   :  { %v691_v42 = vadd.f32 %v690_v40, %v684_v41 }
 0x267   :  { %v692_v43 = vrot.slane %v691_v42, 4 }
 0x269   :  { %v693_v44 = vadd.f32 %v692_v43, %v691_v42 }
 0x26b   :  { %v694_v45 = vrot.slane %v693_v44, 2 }
 0x26d   :  { %v695_v46 = vadd.f32 %v694_v45, %v693_v44 }
 0x26e   :  { %v2148_v28 = vpop.f32.mrf.mxu0 }
 0x26f   :  { %v696_v47 = vrot.slane %v695_v46, 1 }
 0x271   :  { %v697_v48 = vadd.f32 %v696_v47, %v695_v46 }
 0x273   :  { %v698_v49 = vmul.f32 0.03125, %v697_v48 }
 0x275   :  { %v699_v50 = vsub.f32 %v673_v33, %v698_v49  ;;  %v700_v51 = vsub.f32 %v676_v30, %v698_v49  ;;  %v701_v52 = vsub.f32 %v681_v34, %v698_v49  ;;  %v702_v53 = vsub.f32 %v684_v41, %v698_v49  ;;  %v1008_v30 = vpop.f32.mrf.mxu0  ;;  %v2271_v33 = vld [vmem:[#allocation9 + $0x10] sm:$0xff]  }
 0x277   :  { %v703_v54 = vmul.f32 %v699_v50, %v699_v50  ;;  %v704_v55 = vmul.f32 %v700_v51, %v700_v51  ;;  %v705_v56 = vmul.f32 %v701_v52, %v701_v52  ;;  %v706_v58 = vmul.f32 %v702_v53, %v702_v53  ;;  %v2149_v32 = vpop.f32.mrf.mxu0 }
 0x279   :  { %v707_v57 = vadd.f32 %v704_v55, %v703_v54  ;;  %v1011_v34 = vpop.f32.mrf.mxu0 }
 0x27a   :  { %v1025_v39 = vadd.f32 %v1011_v34, %v1008_v30 }
 0x27b   :  { %v708_v59 = vadd.f32 %v707_v57, %v705_v56 }
 0x27c   :  { %v1026_v40 = vadd.f32 %v2148_v28, %v1025_v39 }
 0x27d   :  { %v709_v60 = vadd.f32 %v708_v59, %v706_v58 }
 0x27e   :  { %v1027_v41 = vadd.f32 %v2149_v32, %v1026_v40 }
 0x27f   :  { %v710_v61 = vrot.slane %v709_v60, 4 }
 0x280   :  { %v1028_v42 = vrot.slane %v1027_v41, 4 }
 0x281   :  { %v711_v62 = vadd.f32 %v710_v61, %v709_v60 }
 0x282   :  { %v1029_v43 = vadd.f32 %v1028_v42, %v1027_v41  ;;  %v1023_v42 = vld [vmem:[%s2790_s11] sm:$0x1] }
 0x283   :  { %v712_v63 = vrot.slane %v711_v62, 2 }
 0x284   :  { %v1030_v44 = vrot.slane %v1029_v43, 2 }
 0x285   :  { %v713_v0 = vadd.f32 %v712_v63, %v711_v62 }
 0x286   :  { %v1031_v45 = vadd.f32 %v1030_v44, %v1029_v43 }
 0x287   :  { %v714_v1 = vrot.slane %v713_v0, 1 }
 0x288   :  { %v1032_v46 = vrot.slane %v1031_v45, 1 }
 0x289   :  { %v715_v2 = vadd.f32 %v714_v1, %v713_v0 }
 0x28a   :  { %v1033_v47 = vadd.f32 %v1032_v46, %v1031_v45  ;;  %v858_v45 = vld [vmem:[%s2787_s8] sm:$0x1] }
 0x28b   :  { %v716_v3 = vmul.f32 0.03125, %v715_v2 }
 0x28c   :  { %v1034_v48 = vmul.f32 0.03125, %v1033_v47 }
 0x28d   :  { %v717_v4 = vmax.f32 %v716_v3, 0.0 }
 0x28e   :  { %v2663_v49 = vsub.f32 %v1008_v30, %v1034_v48  ;;  %v1038_v54 = vsub.f32 %v2149_v32, %v1034_v48 }
 0x28f   :  { %v718_v5 = vadd.f32 1e-05, %v717_v4 }
 0x290   :  { %v1042_v58 = vmul.f32 %v1038_v54, %v1038_v54 }
 0x291   :  { %2308 = vrsqrt.f32 %v718_v5 }
 0x29e   :  { %v2309_v6 = vpop.eup %2308 }
 0x29f   :  { %v720_v7 = vmul.f32 %v2309_v6, %v687_v38 }
 0x2a1   :  { %v724_v8 = vrot.slane %v720_v7, %v2631_v14 }
 0x2a3   :  { %v727_v10 = vmul.f32 %v724_v8, %v701_v52  ;;  %v728_v11 = vmul.f32 %v724_v8, %v702_v53  ;;  %v725_v12 = vmul.f32 %v724_v8, %v699_v50  ;;  %v726_v15 = vmul.f32 %v724_v8, %v700_v51 }
 0x2a4   :  { %v1036_v50 = vsub.f32 %v1011_v34, %v1034_v48  ;;  %v1037_v51 = vsub.f32 %v2148_v28, %v1034_v48  ;;  %v1039_v52 = vmul.f32 %v2663_v49, %v2663_v49 }
 0x2a5   :  { %v737_v16 = vadd.f32 %v1882_v9, %v727_v10  ;;  %v738_v17 = vadd.f32 %v1882_v9, %v728_v11  ;;  %v735_v13 = vadd.f32 %v1882_v9, %v725_v12  ;;  %v736_v18 = vadd.f32 %v1882_v9, %v726_v15 }
 0x2a6   :  { %v1040_v53 = vmul.f32 %v1036_v50, %v1036_v50  ;;  %v1041_v55 = vmul.f32 %v1037_v51, %v1037_v51 }
 0x2a7   :  { %v741_v19 = vmax.f32 %v737_v16, 0.0  ;;  %v742_v20 = vmax.f32 %v738_v17, 0.0  ;;  %v739_v21 = vmax.f32 %v735_v13, 0.0  ;;  %v740_v22 = vmax.f32 %v736_v18, 0.0 }
 0x2a8   :  { %v1043_v56 = vadd.f32 %v1040_v53, %v1039_v52 }
 0x2a9   :  { %v744_v23 = vpack.c.bf16 %v742_v20, %v741_v19  ;;  %v743_v24 = vpack.c.bf16 %v740_v22, %v739_v21 }
 0x2aa   :  { %v1044_v59 = vadd.f32 %v1043_v56, %v1041_v55  ;;  %v1900_v56 = vld [vmem:[%s2791_s12] ss:$0 sm:$0xff] }
 0x2ab   :  { %2126 = vmatprep.mubr.bf16.mxu1 %v743_v24 }
 0x2ac   :  { %2127 = vmatmul.mubr.bf16.vlgmr.msra.gmra.mxu1 %v744_v23  ;;  %v1045_v62 = vadd.f32 %v1044_v59, %v1042_v58  ;;  %v1891_v58 = vld [vmem:[%s2788_s9] ss:$0 sm:$0xff] }
 0x2ad   :  { %2151 = vmatpush3.bf16.msra.mxu1 %v2266_v25 }
 0x2ae   :  { %2152 = vmatprep.subr.bf16.mxu1 %v2267_v26  ;;  %v1046_v2 = vrot.slane %v1045_v62, 4 }
 0x2b0   :  { %v1047_v5 = vadd.f32 %v1046_v2, %v1045_v62 }
 0x2b1   :  { %2153 = vmatpush3.bf16.msra.mxu1 %v2267_v26 }
 0x2b2   :  { %2154 = vmatprep.subr.bf16.mxu1 %v2268_v27  ;;  %v1048_v7 = vrot.slane %v1047_v5, 2 }
 0x2b4   :  { %v1049_v10 = vadd.f32 %v1048_v7, %v1047_v5 }
 0x2b5   :  { %2155 = vmatpush3.bf16.msra.mxu1 %v2268_v27 }
 0x2b6   :  { %2156 = vmatprep.subr.bf16.mxu1 %v2269_v29  ;;  %v1050_v15 = vrot.slane %v1049_v10, 1 }
 0x2b8   :  { %v1051_v21 = vadd.f32 %v1050_v15, %v1049_v10  ;;  %v2275_v15 = vld [vmem:[#allocation10 + $0x78] sm:$0xff]  }
 0x2b9   :  { %2157 = vmatpush3.bf16.msra.mxu1 %v2269_v29  ;;  %2022 = vmatprep.subr.bf16.mxu0 %v2275_v15 }
 0x2ba   :  { %2158 = vmatprep.subr.bf16.mxu1 %v2270_v31  ;;  %v1052_v26 = vmul.f32 0.03125, %v1051_v21  ;;  %v2282_v21 = vld [vmem:[#allocation10 + $0xa0] sm:$0xff]  }
 0x2bc   :  { %v1053_v29 = vmax.f32 %v1052_v26, 0.0  ;;  %v2287_v26 = vld [vmem:[#allocation10 + $0x58] sm:$0xff]  }
 0x2bd   :  { %2159 = vmatpush3.bf16.msra.mxu1 %v2270_v31 }
 0x2be   :  { %2160 = vmatprep.subr.bf16.mxu1 %v2271_v33  ;;  %v1054_v32 = vadd.f32 1e-05, %v1053_v29  ;;  %v2290_v29 = vld [vmem:[#allocation10 + $0x50] sm:$0xff]  }
 0x2c0   :  { %2310 = vrsqrt.f32 %v1054_v32  ;;  %v2293_v32 = vld [vmem:[#allocation10 + $0x48] sm:$0xff]  }
 0x2c1   :  { %2161 = vmatpush3.bf16.msra.mxu1 %v2271_v33 }
 0x2c2   :  { %2162 = vmatprep.subr.bf16.mxu1 %v2272_v36 }
 0x2c5   :  { %2163 = vmatpush3.bf16.msra.mxu1 %v2272_v36 }
 0x2c6   :  { %2164 = vmatprep.subr.bf16.mxu1 %v2273_v37 }
 0x2c9   :  { %2165 = vmatpush3.bf16.msra.mxu1 %v2273_v37 }
 0x2cd   :  { %v2311_v41 = vpop.eup %2310 }
 0x2ce   :  { %v1056_v43 = vmul.f32 %v2311_v41, %v1023_v42 }
 0x2d0   :  { %v1060_v44 = vrot.slane %v1056_v43, %v2631_v14 }
 0x2d2   :  { %v1062_v48 = vmul.f32 %v1060_v44, %v1036_v50  ;;  %v1063_v52 = vmul.f32 %v1060_v44, %v1037_v51  ;;  %v1061_v53 = vmul.f32 %v1060_v44, %v2663_v49  ;;  %v1064_v55 = vmul.f32 %v1060_v44, %v1038_v54 }
 0x2d4   :  { %v1071_v50 = vadd.f32 %v1900_v56, %v1061_v53  ;;  %v1073_v51 = vadd.f32 %v1900_v56, %v1063_v52 }
 0x36c   :  { %v2128_v57 = vpop.f32.mrf.mxu1 }
 0x36e   :  { %v843_v60 = vpop.f32.mrf.mxu1 }
 0x370   :  { %v2129_v61 = vpop.f32.mrf.mxu1 }
 0x372   :  { %v846_v63 = vpop.f32.mrf.mxu1 }
 0x373   :  { %v860_v0 = vadd.f32 %v846_v63, %v843_v60 }
 0x375   :  { %v861_v1 = vadd.f32 %v2128_v57, %v860_v0  ;;  %v1074_v0 = vadd.f32 %v1900_v56, %v1064_v55 }
 0x377   :  { %v862_v3 = vadd.f32 %v2129_v61, %v861_v1 }
 0x379   :  { %v863_v4 = vrot.slane %v862_v3, 4 }
 0x37b   :  { %v864_v38 = vadd.f32 %v863_v4, %v862_v3 }
 0x37d   :  { %v865_v6 = vrot.slane %v864_v38, 2 }
 0x37f   :  { %v866_v8 = vadd.f32 %v865_v6, %v864_v38 }
 0x381   :  { %v867_v9 = vrot.slane %v866_v8, 1 }
 0x383   :  { %v868_v11 = vadd.f32 %v867_v9, %v866_v8 }
 0x385   :  { %v869_v12 = vmul.f32 0.03125, %v868_v11 }
 0x387   :  { %v870_v16 = vsub.f32 %v843_v60, %v869_v12  ;;  %v871_v17 = vsub.f32 %v846_v63, %v869_v12  ;;  %v872_v13 = vsub.f32 %v2128_v57, %v869_v12  ;;  %v873_v18 = vsub.f32 %v2129_v61, %v869_v12  ;;  %v2274_v12 = vld [vmem:[#allocation10 + $0xb8] sm:$0xff]  }
 0x388   :  { %v1072_v63 = vadd.f32 %v1900_v56, %v1062_v48  ;;  %2170 = vmatprep.subr.bf16.mxu1 %v2274_v12 }
 0x389   :  { %v874_v19 = vmul.f32 %v870_v16, %v870_v16  ;;  %v875_v20 = vmul.f32 %v871_v17, %v871_v17  ;;  %v876_v22 = vmul.f32 %v872_v13, %v872_v13  ;;  %v877_v24 = vmul.f32 %v873_v18, %v873_v18 }
 0x38b   :  { %v878_v23 = vadd.f32 %v875_v20, %v874_v19  ;;  %v2280_v19 = vld [vmem:[#allocation10 + $0x30] sm:$0xff]   ;;  %v2281_v20 = vld [vmem:[#allocation10 + $0x68] sm:$0xff]  }
 0x38d   :  { %v879_v25 = vadd.f32 %v878_v23, %v876_v22  ;;  %v2283_v22 = vld [vmem:[#allocation10 + $0x28] sm:$0xff]   ;;  %v2284_v23 = vld [vmem:[#allocation10 + $0x60] sm:$0xff]  }
 0x38f   :  { %v880_v27 = vadd.f32 %v879_v25, %v877_v24  ;;  %v2285_v24 = vld [vmem:[#allocation10 + $0x98] sm:$0xff]   ;;  %v2286_v25 = vld [vmem:[#allocation10 + $0x20] sm:$0xff]  }
 0x391   :  { %v881_v28 = vrot.slane %v880_v27, 4 }
 0x393   :  { %v882_v30 = vadd.f32 %v881_v28, %v880_v27  ;;  %v2288_v27 = vld [vmem:[#allocation10 + $0x90] sm:$0xff]   ;;  %v2289_v28 = vld [vmem:[#allocation10 + $0x18] sm:$0xff]  }
 0x395   :  { %v883_v31 = vrot.slane %v882_v30, 2 }
 0x397   :  { %v884_v33 = vadd.f32 %v883_v31, %v882_v30  ;;  %v2291_v30 = vld [vmem:[#allocation10 + $0x88] sm:$0xff]   ;;  %v2292_v31 = vld [vmem:[#allocation10 + $0x10] sm:$0xff]  }
 0x399   :  { %v885_v34 = vrot.slane %v884_v33, 1 }
 0x39b   :  { %v886_v36 = vadd.f32 %v885_v34, %v884_v33  ;;  %v2294_v33 = vld [vmem:[#allocation10 + $0x80] sm:$0xff]   ;;  %v2295_v34 = vld [vmem:[#allocation10 + $0x8] sm:$0xff]  }
 0x39d   :  { %v887_v37 = vmul.f32 0.03125, %v886_v36  ;;  %v2296_v36 = vld [vmem:[#allocation10 + $0x40] sm:$0xff]  }
 0x39f   :  { %v888_v39 = vmax.f32 %v887_v37, 0.0  ;;  %v2297_v37 = vld [vmem:[#allocation10] sm:$0xff]  }
 0x3a1   :  { %v889_v40 = vadd.f32 1e-05, %v888_v39 }
 0x3a3   :  { %2312 = vrsqrt.f32 %v889_v40 }
 0x3b0   :  { %v2313_v46 = vpop.eup %2312 }
 0x3b1   :  { %v891_v47 = vmul.f32 %v2313_v46, %v858_v45 }
 0x3b3   :  { %v895_v57 = vrot.slane %v891_v47, %v2631_v14 }
 0x3b5   :  { %v897_v59 = vmul.f32 %v895_v57, %v871_v17  ;;  %v898_v60 = vmul.f32 %v895_v57, %v872_v13  ;;  %v896_v61 = vmul.f32 %v895_v57, %v870_v16  ;;  %v899_v62 = vmul.f32 %v895_v57, %v873_v18  ;;  %v2276_v16 = vld [vmem:[#allocation10 + $0xb0] sm:$0xff]   ;;  %v2277_v17 = vld [vmem:[#allocation10 + $0x38] sm:$0xff]   ;;  %v2279_v18 = vld [vmem:[#allocation10 + $0xa8] sm:$0xff]  }
 0x3b6   :  { %2023 = vmatpush3.bf16.msra.mxu0 %v2277_v17  ;;  %v2278_v13 = vld [vmem:[#allocation10 + $0x70] sm:$0xff]  }
 0x3b7   :  { %v907_v49 = vadd.f32 %v1891_v58, %v897_v59  ;;  %v906_v54 = vadd.f32 %v1891_v58, %v896_v61  ;;  %v908_v1 = vadd.f32 %v1891_v58, %v898_v60  ;;  %v909_v2 = vadd.f32 %v1891_v58, %v899_v62  ;;  %2024 = vmatprep.subr.bf16.mxu0 %v2278_v13  ;;  %v1198_v13 = vld [vmem:[%s2793_s14] sm:$0x1] }
 0x3b9   :  { %v2682_v3 = vadd.f32 %v1071_v50, %v906_v54  ;;  %v2684_v4 = vadd.f32 %v1072_v63, %v907_v49  ;;  %v2686_v5 = vadd.f32 %v1073_v51, %v908_v1  ;;  %v2688_v38 = vadd.f32 %v1074_v0, %v909_v2 }
 0x3ba   :  { %2025 = vmatpush3.bf16.msra.mxu0 %v2280_v19 }
 0x3bb   :  { %v1079_v6 = vmax.f32 %v2682_v3, 0.0  ;;  %v1080_v7 = vmax.f32 %v2684_v4, 0.0  ;;  %v1081_v8 = vmax.f32 %v2686_v5, 0.0  ;;  %v1082_v9 = vmax.f32 %v2688_v38, 0.0  ;;  %2026 = vmatprep.subr.bf16.mxu0 %v2281_v20 }
 0x3bd   :  { %v1083_v10 = vpack.c.bf16 %v1080_v7, %v1079_v6  ;;  %v1084_v11 = vpack.c.bf16 %v1082_v9, %v1081_v8 }
 0x3be   :  { %2027 = vmatpush3.bf16.msra.mxu0 %v2283_v22 }
 0x3bf   :  { %2166 = vmatprep.mubr.bf16.mxu1 %v1083_v10  ;;  %2028 = vmatprep.subr.bf16.mxu0 %v2284_v23 }
 0x3c0   :  { %2167 = vmatmul.mubr.bf16.vlgmr.msra.gmra.mxu1 %v1084_v11 }
 0x3c1   :  { %2171 = vmatpush3.bf16.msra.mxu1 %v2274_v12 }
 0x3c2   :  { %2172 = vmatprep.subr.bf16.mxu1 %v2276_v16  ;;  %2029 = vmatpush3.bf16.msra.mxu0 %v2286_v25 }
 0x3c3   :  { %2030 = vmatprep.subr.bf16.mxu0 %v2287_v26 }
 0x3c5   :  { %2173 = vmatpush3.bf16.msra.mxu1 %v2276_v16 }
 0x3c6   :  { %2174 = vmatprep.subr.bf16.mxu1 %v2279_v18  ;;  %2031 = vmatpush3.bf16.msra.mxu0 %v2289_v28 }
 0x3c7   :  { %2032 = vmatprep.subr.bf16.mxu0 %v2290_v29 }
 0x3c9   :  { %2175 = vmatpush3.bf16.msra.mxu1 %v2279_v18 }
 0x3ca   :  { %2176 = vmatprep.subr.bf16.mxu1 %v2282_v21  ;;  %2033 = vmatpush3.bf16.msra.mxu0 %v2292_v31 }
 0x3cb   :  { %2034 = vmatprep.subr.bf16.mxu0 %v2293_v32 }
 0x3cd   :  { %2177 = vmatpush3.bf16.msra.mxu1 %v2282_v21  ;;  %v1909_v21 = vld [vmem:[%s2794_s15] ss:$0 sm:$0xff] }
 0x3ce   :  { %2178 = vmatprep.subr.bf16.mxu1 %v2285_v24  ;;  %2035 = vmatpush3.bf16.msra.mxu0 %v2295_v34 }
 0x3cf   :  { %2036 = vmatprep.subr.bf16.mxu0 %v2296_v36 }
 0x3d1   :  { %2179 = vmatpush3.bf16.msra.mxu1 %v2285_v24 }
 0x3d2   :  { %2180 = vmatprep.subr.bf16.mxu1 %v2288_v27  ;;  %2037 = vmatpush3.bf16.msra.mxu0 %v2297_v37 }
 0x3d5   :  { %2181 = vmatpush3.bf16.msra.mxu1 %v2288_v27 }
 0x3d6   :  { %2182 = vmatprep.subr.bf16.mxu1 %v2291_v30 }
 0x3d9   :  { %2183 = vmatpush3.bf16.msra.mxu1 %v2291_v30 }
 0x3da   :  { %2184 = vmatprep.subr.bf16.mxu1 %v2294_v33 }
 0x3dd   :  { %2185 = vmatpush3.bf16.msra.mxu1 %v2294_v33 }
 0x480   :  { %v2168_v39 = vpop.f32.mrf.mxu1 }
 0x482   :  { %v1183_v40 = vpop.f32.mrf.mxu1 }
 0x484   :  { %v2169_v41 = vpop.f32.mrf.mxu1 }
 0x486   :  { %v1186_v42 = vpop.f32.mrf.mxu1 }
 0x487   :  { %v1200_v43 = vadd.f32 %v1186_v42, %v1183_v40 }
 0x489   :  { %v1201_v44 = vadd.f32 %v2168_v39, %v1200_v43 }
 0x48b   :  { %v1202_v45 = vadd.f32 %v2169_v41, %v1201_v44 }
 0x48d   :  { %v1203_v46 = vrot.slane %v1202_v45, 4 }
 0x48f   :  { %v1204_v47 = vadd.f32 %v1203_v46, %v1202_v45 }
 0x491   :  { %v1205_v48 = vrot.slane %v1204_v47, 2 }
 0x493   :  { %v1206_v52 = vadd.f32 %v1205_v48, %v1204_v47 }
 0x495   :  { %v1207_v53 = vrot.slane %v1206_v52, 1 }
 0x497   :  { %v1208_v55 = vadd.f32 %v1207_v53, %v1206_v52 }
 0x499   :  { %v1209_v56 = vmul.f32 0.03125, %v1208_v55 }
 0x49b   :  { %v1210_v57 = vsub.f32 %v1183_v40, %v1209_v56  ;;  %v1211_v58 = vsub.f32 %v1186_v42, %v1209_v56  ;;  %v1212_v59 = vsub.f32 %v2168_v39, %v1209_v56  ;;  %v1213_v60 = vsub.f32 %v2169_v41, %v1209_v56 }
 0x49d   :  { %v1214_v61 = vmul.f32 %v1210_v57, %v1210_v57  ;;  %v1215_v62 = vmul.f32 %v1211_v58, %v1211_v58  ;;  %v1216_v63 = vmul.f32 %v1212_v59, %v1212_v59  ;;  %v1217_v51 = vmul.f32 %v1213_v60, %v1213_v60 }
 0x49f   :  { %v1218_v50 = vadd.f32 %v1215_v62, %v1214_v61 }
 0x4a1   :  { %v1219_v0 = vadd.f32 %v1218_v50, %v1216_v63 }
 0x4a3   :  { %v1220_v49 = vadd.f32 %v1219_v0, %v1217_v51 }
 0x4a5   :  { %v1221_v54 = vrot.slane %v1220_v49, 4 }
 0x4a7   :  { %v1222_v1 = vadd.f32 %v1221_v54, %v1220_v49 }
 0x4a9   :  { %v1223_v2 = vrot.slane %v1222_v1, 2 }
 0x4ab   :  { %v1224_v10 = vadd.f32 %v1223_v2, %v1222_v1 }
 0x4ad   :  { %v1225_v11 = vrot.slane %v1224_v10, 1 }
 0x4af   :  { %v1226_v12 = vadd.f32 %v1225_v11, %v1224_v10 }
 0x4b1   :  { %v1227_v15 = vmul.f32 0.03125, %v1226_v12  ;;  %v2298_v12 = vld [vmem:[%s2798_s19 + $0x38] sm:$0xff]  }
 0x4b2   :  { %2190 = vmatprep.subr.bf16.mxu0 %v2298_v12 }
 0x4b3   :  { %v1228_v16 = vmax.f32 %v1227_v15, 0.0  ;;  %v2299_v15 = vld [vmem:[%s2798_s19 + $0x30] sm:$0xff]  }
 0x4b5   :  { %v1229_v17 = vadd.f32 1e-05, %v1228_v16  ;;  %v2300_v16 = vld [vmem:[%s2798_s19 + $0x28] sm:$0xff]  }
 0x4b7   :  { %2314 = vrsqrt.f32 %v1229_v17  ;;  %v2301_v17 = vld [vmem:[%s2798_s19 + $0x20] sm:$0xff]  }
 0x4c4   :  { %v2315_v18 = vpop.eup %2314 }
 0x4c5   :  { %v1231_v19 = vmul.f32 %v2315_v18, %v1198_v13  ;;  %v2302_v13 = vld [vmem:[%s2798_s19 + $0x18] sm:$0xff]   ;;  %v2303_v18 = vld [vmem:[%s2798_s19 + $0x10] sm:$0xff]  }
 0x4c7   :  { %v1235_v20 = vrot.slane %v1231_v19, %v2631_v14  ;;  %v2304_v19 = vld [vmem:[%s2798_s19 + $0x8] sm:$0xff]  }
 0x4c9   :  { %v1236_v22 = vmul.f32 %v1235_v20, %v1210_v57  ;;  %v1237_v23 = vmul.f32 %v1235_v20, %v1211_v58  ;;  %v1238_v24 = vmul.f32 %v1235_v20, %v1212_v59  ;;  %v1239_v25 = vmul.f32 %v1235_v20, %v1213_v60  ;;  %v2305_v20 = vld [vmem:[%s2798_s19] sm:$0xff]  }
 0x4cb   :  { %v1246_v26 = vadd.f32 %v1909_v21, %v1236_v22  ;;  %v1247_v27 = vadd.f32 %v1909_v21, %v1237_v23  ;;  %v1248_v28 = vadd.f32 %v1909_v21, %v1238_v24  ;;  %v1249_v29 = vadd.f32 %v1909_v21, %v1239_v25 }
 0x4cd   :  { %v1250_v30 = vmax.f32 %v1246_v26, 0.0  ;;  %v1251_v31 = vmax.f32 %v1247_v27, 0.0  ;;  %v1252_v32 = vmax.f32 %v1248_v28, 0.0  ;;  %v1253_v33 = vmax.f32 %v1249_v29, 0.0 }
 0x4cf   :  { %v1254_v34 = vpack.c.bf16 %v1251_v31, %v1250_v30  ;;  %v1255_v36 = vpack.c.bf16 %v1253_v33, %v1252_v32 }
 0x4d1   :  { %v1257_v37 = vshrl.u32 %v1254_v34, 16  ;;  %v1264_v39 = vshrl.u32 %v1255_v36, 16  ;;  %v1260_v40 = vshll.u32 %v1254_v34, 16  ;;  %v1267_v43 = vshll.u32 %v1255_v36, 16 }
 0x4d3   :  { %v1259_v41 = vrot.slane %v1257_v37, 7  ;;  %v1266_v42 = vrot.slane %v1264_v39, 7 }
 0x4d5   :  { %v1262_v44 = vor.u32 %v1260_v40, %v1259_v41  ;;  %v1276_v45 = vsel %vm2637_vm2, %v1259_v41, 0  ;;  %v1269_v46 = vor.u32 %v1267_v43, %v1266_v42  ;;  %v1277_v47 = vsel %vm2637_vm2, %v1266_v42, 0 }
 0x4d6   :  { %v1309_v52 = vrot.slane %v1276_v45, 1  ;;  %v1312_v55 = vrot.slane %v1277_v47, 1  ;;  %v1286_v59 = vshll.u32 %v1276_v45, 16  ;;  %v1298_v61 = vshll.u32 %v1277_v47, 16 }
 0x4d7   :  { %v1274_v48 = vsel %vm2637_vm2, 0, %v1262_v44  ;;  %v1275_v53 = vsel %vm2637_vm2, 0, %v1269_v46 }
 0x4d8   :  { %v1308_v56 = vrot.slane %v1274_v48, 1  ;;  %v1311_v57 = vrot.slane %v1275_v53, 1  ;;  %v1281_v58 = vshll.u32 %v1274_v48, 16  ;;  %v1293_v60 = vshll.u32 %v1275_v53, 16 }
 0x4d9   :  { %v1279_v50 = vshrl.u32 %v1274_v48, 16  ;;  %v1291_v0 = vshrl.u32 %v1275_v53, 16  ;;  %v1288_v35 = vrot.slane %v1286_v59, 1  ;;  %v1300_v10 = vrot.slane %v1298_v61, 1 }
 0x4da   :  { %v1310_v62 = vsel %vm388_vm3, %v1308_v56, %v1309_v52  ;;  %v1313_v63 = vsel %vm388_vm3, %v1311_v57, %v1312_v55  ;;  %v1283_v51 = vrot.slane %v1281_v58, 1  ;;  %v1295_v49 = vrot.slane %v1293_v60, 1 }
 0x4db   :  { %2186 = vmatprep.mubr.bf16.mxu1 %v1310_v62 }
 0x4dc   :  { %2187 = vmatmul.mubr.bf16.vlgmr.msra.gmra.mxu1 %v1313_v63  ;;  %v1284_v54 = vor.u32 %v1283_v51, %v1279_v50  ;;  %v1296_v1 = vor.u32 %v1295_v49, %v1291_v0 }
 0x4de   :  { %v1289_v2 = vsel %vm357_vm4, %v1284_v54, %v1288_v35  ;;  %v1301_v11 = vsel %vm357_vm4, %v1296_v1, %v1300_v10 }
 0x4df   :  { %1540 = vmatprep.mubr.bf16.mxu0 %v1289_v2 }
 0x4e0   :  { %1541 = vmatmul.mubr.bf16.vlgmr.msra.gmra.mxu0 %v1274_v48 }
 0x4e1   :  { %1548 = vmatprep.mubr.bf16.mxu0 %v1301_v11  ;;  %2191 = vmatpush3.bf16.msra.mxu0 %v2298_v12 }
 0x4e2   :  { %2192 = vmatprep.subr.bf16.mxu0 %v2299_v15 }
 0x4e5   :  { %2193 = vmatpush3.bf16.msra.mxu0 %v2299_v15 }
 0x4e6   :  { %2194 = vmatprep.subr.bf16.mxu0 %v2300_v16 }
 0x4e8   :  { %1549 = vmatmul.mubr.bf16.gmra.mxu0 %v1275_v53 }
 0x4e9   :  { %2195 = vmatpush3.bf16.msra.mxu0 %v2300_v16 }
 0x4ea   :  { %2196 = vmatprep.subr.bf16.mxu0 %v2301_v17 }
 0x4ed   :  { %2197 = vmatpush3.bf16.msra.mxu0 %v2301_v17  ;;  %v1606_v17 = vld [vmem:[%s2796_s17] sm:$0x1] }
 0x4ee   :  { %2198 = vmatprep.subr.bf16.mxu0 %v2302_v13 }
 0x4f1   :  { %2199 = vmatpush3.bf16.msra.mxu0 %v2302_v13 }
 0x4f2   :  { %2200 = vmatprep.subr.bf16.mxu0 %v2303_v18 }
 0x4f5   :  { %2201 = vmatpush3.bf16.msra.mxu0 %v2303_v18 }
 0x4f6   :  { %2202 = vmatprep.subr.bf16.mxu0 %v2304_v19 }
 0x4f9   :  { %2203 = vmatpush3.bf16.msra.mxu0 %v2304_v19 }
 0x4fa   :  { %2204 = vmatprep.subr.bf16.mxu0 %v2305_v20 }
 0x4fd   :  { %2205 = vmatpush3.bf16.msra.mxu0 %v2305_v20  ;;  %v1934_v20 = vld [vmem:[%s2797_s18] ss:$0 sm:$0xff] }
 0x59c   :  { %v2188_v21 = vpop.f32.mrf.mxu1 }
 0x59e   :  { %v1591_v23 = vpop.f32.mrf.mxu1 }
 0x5a0   :  { %v2038_v22 = vpop.f32.mrf.mxu0  ;;  %v2189_v26 = vpop.f32.mrf.mxu1 }
 0x5a2   :  { %v2039_v24 = vpop.f32.mrf.mxu0  ;;  %v1594_v31 = vpop.f32.mrf.mxu1 }
 0x5a3   :  { %v2040_v30 = vadd.f32 %v2039_v24, %v2038_v22 }
 0x5a4   :  { %v2041_v25 = vpop.f32.mrf.mxu0 }
 0x5a5   :  { %v1592_v37 = vadd.f32 %v2040_v30, %v1591_v23 }
 0x5a6   :  { %v2042_v27 = vpop.f32.mrf.mxu0 }
 0x5a7   :  { %v2043_v28 = vadd.f32 %v2042_v27, %v2041_v25 }
 0x5a8   :  { %v2044_v29 = vpop.f32.mrf.mxu0 }
 0x5a9   :  { %v1595_v33 = vadd.f32 %v2043_v28, %v1594_v31 }
 0x5aa   :  { %v2045_v32 = vpop.f32.mrf.mxu0 }
 0x5ab   :  { %v2046_v34 = vadd.f32 %v2045_v32, %v2044_v29  ;;  %v1608_v41 = vadd.f32 %v1595_v33, %v1592_v37 }
 0x5ac   :  { %v2047_v36 = vpop.f32.mrf.mxu0 }
 0x5ad   :  { %v1600_v39 = vadd.f32 %v2188_v21, %v2046_v34 }
 0x5ae   :  { %v2048_v40 = vpop.f32.mrf.mxu0 }
 0x5af   :  { %v2049_v42 = vadd.f32 %v2048_v40, %v2047_v36  ;;  %v1609_v43 = vadd.f32 %v1608_v41, %v1600_v39 }
 0x5b1   :  { %v1603_v44 = vadd.f32 %v2189_v26, %v2049_v42 }
 0x5b3   :  { %v1610_v45 = vadd.f32 %v1609_v43, %v1603_v44 }
 0x5b5   :  { %v1611_v46 = vrot.slane %v1610_v45, 4 }
 0x5b7   :  { %v1612_v47 = vadd.f32 %v1611_v46, %v1610_v45 }
 0x5b9   :  { %v1613_v48 = vrot.slane %v1612_v47, 2 }
 0x5bb   :  { %v1614_v52 = vadd.f32 %v1613_v48, %v1612_v47 }
 0x5bd   :  { %v1615_v53 = vrot.slane %v1614_v52, 1 }
 0x5bf   :  { %v1616_v55 = vadd.f32 %v1615_v53, %v1614_v52 }
 0x5c1   :  { %v1617_v56 = vmul.f32 0.03125, %v1616_v55 }
 0x5c3   :  { %v1618_v57 = vsub.f32 %v1592_v37, %v1617_v56  ;;  %v1619_v58 = vsub.f32 %v1595_v33, %v1617_v56  ;;  %v1620_v59 = vsub.f32 %v1600_v39, %v1617_v56  ;;  %v1621_v60 = vsub.f32 %v1603_v44, %v1617_v56 }
 0x5c5   :  { %v1622_v61 = vmul.f32 %v1618_v57, %v1618_v57  ;;  %v1623_v62 = vmul.f32 %v1619_v58, %v1619_v58  ;;  %v1624_v63 = vmul.f32 %v1620_v59, %v1620_v59  ;;  %v1625_v51 = vmul.f32 %v1621_v60, %v1621_v60 }
 0x5c7   :  { %v1626_v50 = vadd.f32 %v1623_v62, %v1622_v61 }
 0x5c9   :  { %v1627_v0 = vadd.f32 %v1626_v50, %v1624_v63 }
 0x5cb   :  { %v1628_v49 = vadd.f32 %v1627_v0, %v1625_v51 }
 0x5cd   :  { %v1629_v54 = vrot.slane %v1628_v49, 4 }
 0x5cf   :  { %v1630_v35 = vadd.f32 %v1629_v54, %v1628_v49 }
 0x5d1   :  { %v1631_v1 = vrot.slane %v1630_v35, 2 }
 0x5d3   :  { %v1632_v2 = vadd.f32 %v1631_v1, %v1630_v35 }
 0x5d5   :  { %v1633_v10 = vrot.slane %v1632_v2, 1 }
 0x5d7   :  { %v1634_v11 = vadd.f32 %v1633_v10, %v1632_v2 }
 0x5d9   :  { %v1635_v12 = vmul.f32 0.03125, %v1634_v11 }
 0x5db   :  { %v1636_v15 = vmax.f32 %v1635_v12, 0.0 }
 0x5dd   :  { %v1637_v16 = vadd.f32 1e-05, %v1636_v15  ;;  %v1777_v15 = vld [vmem:[%s2799_s20] sm:$0x1] }
 0x5df   :  { %2316 = vrsqrt.f32 %v1637_v16 }
 0x5ec   :  { %v2317_v13 = vpop.eup %2316 }
 0x5ed   :  { %v1639_v18 = vmul.f32 %v2317_v13, %v1606_v17 }
 0x5ef   :  { %v1643_v19 = vrot.slane %v1639_v18, %v2631_v14  ;;  %v1943_v18 = vld [vmem:[%s2800_s21] ss:$0 sm:$0xff] }
 0x5f1   :  { %v1646_v21 = vmul.f32 %v1643_v19, %v1620_v59  ;;  %v1647_v22 = vmul.f32 %v1643_v19, %v1621_v60  ;;  %v1644_v23 = vmul.f32 %v1643_v19, %v1618_v57  ;;  %v1645_v24 = vmul.f32 %v1643_v19, %v1619_v58 }
 0x5f3   :  { %v1656_v25 = vadd.f32 %v1934_v20, %v1646_v21  ;;  %v1657_v26 = vadd.f32 %v1934_v20, %v1647_v22  ;;  %v1654_v27 = vadd.f32 %v1934_v20, %v1644_v23  ;;  %v1655_v28 = vadd.f32 %v1934_v20, %v1645_v24 }
 0x5f5   :  { %v1660_v29 = vmax.f32 %v1656_v25, 0.0  ;;  %v1661_v30 = vmax.f32 %v1657_v26, 0.0  ;;  %v1658_v31 = vmax.f32 %v1654_v27, 0.0  ;;  %v1659_v32 = vmax.f32 %v1655_v28, 0.0 }
 0x5f7   :  { %v1663_v33 = vpack.c.bf16 %v1661_v30, %v1660_v29  ;;  %v1662_v34 = vpack.c.bf16 %v1659_v32, %v1658_v31 }
 0x5f9   :  { %2206 = vmatprep.mubr.bf16.mxu0 %v1662_v34 }
 0x5fa   :  { %2207 = vmatmul.mubr.bf16.vlgmr.msra.gmra.mxu0 %v1663_v33 }
 0x6ba   :  { %v2208_v36 = vpop.f32.mrf.mxu0 }
 0x6bc   :  { %v1762_v37 = vpop.f32.mrf.mxu0 }
 0x6be   :  { %v2209_v39 = vpop.f32.mrf.mxu0 }
 0x6c0   :  { %v1765_v40 = vpop.f32.mrf.mxu0 }
 0x6c1   :  { %v1779_v41 = vadd.f32 %v1765_v40, %v1762_v37 }
 0x6c3   :  { %v1780_v42 = vadd.f32 %v2208_v36, %v1779_v41 }
 0x6c5   :  { %v1781_v43 = vadd.f32 %v2209_v39, %v1780_v42 }
 0x6c7   :  { %v1782_v44 = vrot.slane %v1781_v43, 4 }
 0x6c9   :  { %v1783_v45 = vadd.f32 %v1782_v44, %v1781_v43 }
 0x6cb   :  { %v1784_v46 = vrot.slane %v1783_v45, 2 }
 0x6cd   :  { %v1785_v47 = vadd.f32 %v1784_v46, %v1783_v45 }
 0x6cf   :  { %v1786_v48 = vrot.slane %v1785_v47, 1 }
 0x6d1   :  { %v1787_v52 = vadd.f32 %v1786_v48, %v1785_v47 }
 0x6d3   :  { %v1788_v53 = vmul.f32 0.03125, %v1787_v52 }
 0x6d5   :  { %v1789_v55 = vsub.f32 %v1762_v37, %v1788_v53  ;;  %v1790_v56 = vsub.f32 %v1765_v40, %v1788_v53  ;;  %v1791_v57 = vsub.f32 %v2208_v36, %v1788_v53  ;;  %v1792_v58 = vsub.f32 %v2209_v39, %v1788_v53 }
 0x6d7   :  { %v1793_v59 = vmul.f32 %v1789_v55, %v1789_v55  ;;  %v1794_v60 = vmul.f32 %v1790_v56, %v1790_v56  ;;  %v1795_v61 = vmul.f32 %v1791_v57, %v1791_v57  ;;  %v1796_v63 = vmul.f32 %v1792_v58, %v1792_v58 }
 0x6d9   :  { %v1797_v62 = vadd.f32 %v1794_v60, %v1793_v59 }
 0x6db   :  { %v1798_v50 = vadd.f32 %v1797_v62, %v1795_v61 }
 0x6dd   :  { %v1799_v51 = vadd.f32 %v1798_v50, %v1796_v63 }
 0x6df   :  { %v1800_v0 = vrot.slane %v1799_v51, 4 }
 0x6e1   :  { %v1801_v49 = vadd.f32 %v1800_v0, %v1799_v51 }
 0x6e3   :  { %v1802_v54 = vrot.slane %v1801_v49, 2 }
 0x6e5   :  { %v1803_v35 = vadd.f32 %v1802_v54, %v1801_v49 }
 0x6e7   :  { %v1804_v1 = vrot.slane %v1803_v35, 1 }
 0x6e9   :  { %v1805_v2 = vadd.f32 %v1804_v1, %v1803_v35 }
 0x6eb   :  { %v1806_v10 = vmul.f32 0.03125, %v1805_v2 }
 0x6ed   :  { %v1807_v11 = vmax.f32 %v1806_v10, 0.0 }
 0x6ef   :  { %v1808_v12 = vadd.f32 1e-05, %v1807_v11 }
 0x6f1   :  { %2318 = vrsqrt.f32 %v1808_v12 }
 0x6fe   :  { %v2319_v16 = vpop.eup %2318 }
 0x6ff   :  { %v1810_v17 = vmul.f32 %v2319_v16, %v1777_v15 }
 0x701   :  { %v1814_v13 = vrot.slane %v1810_v17, %v2631_v14 }
 0x703   :  { %v1815_v19 = vmul.f32 %v1814_v13, %v1789_v55  ;;  %v1816_v20 = vmul.f32 %v1814_v13, %v1790_v56  ;;  %v1817_v21 = vmul.f32 %v1814_v13, %v1791_v57  ;;  %v1818_v22 = vmul.f32 %v1814_v13, %v1792_v58 }
 0x705   :  { %v1825_v23 = vadd.f32 %v1943_v18, %v1815_v19  ;;  %v1826_v24 = vadd.f32 %v1943_v18, %v1816_v20  ;;  %v1827_v25 = vadd.f32 %v1943_v18, %v1817_v21  ;;  %v1828_v26 = vadd.f32 %v1943_v18, %v1818_v22 }
 0x707   :  { %v1829_v27 = vadd.f32 %v1825_v23, %v1079_v6  ;;  %v1830_v28 = vadd.f32 %v1826_v24, %v1080_v7  ;;  %v1831_v14 = vadd.f32 %v1827_v25, %v1081_v8  ;;  %v1832_v29 = vadd.f32 %v1828_v26, %v1082_v9 }
 0x709   :  { %v1833_v30 = vmax.f32 %v1829_v27, 0.0  ;;  %v1834_v31 = vmax.f32 %v1830_v28, 0.0  ;;  %v1835_v32 = vmax.f32 %v1831_v14, 0.0  ;;  %v1836_v33 = vmax.f32 %v1832_v29, 0.0 }
 0x70b   :  { %1837 = vst [vmem:[%s2801_s22] sm:$0xff] %v1833_v30  ;;  %1838 = vst [vmem:[%s2801_s22 + $0x8] sm:$0xff] %v1834_v31 }
 0x70c   :  { %1839 = vst [vmem:[%s2801_s22 + $0x10] sm:$0xff] %v1835_v32  ;;  %1840 = vst [vmem:[%s2801_s22 + $0x18] sm:$0xff] %v1836_v33 }
 0x70d   :  { %1845 = vsyncpa [#allocation3], 1 }
 0x70e   :  { %1846 = vsyncpa [#allocation5], 1 }
 0x70f   :  { %1847 = vsyncpa [#allocation8], 1 }
 0x710   :  { %1848 = vsyncpa [#allocation11], 1 }

</bundles_post_ra>
